<compile_context>
chip_gen: v5e
topology: v5e:2x2
jax: 0.10.0
libtpu: 0.0.40
codegen_flags: <defaults>
</compile_context>

<pallas_src>
import functools

import numpy as np

import jax
import jax.numpy as jnp
from jax import lax
from jax.experimental import pallas as pl
from jax.experimental.pallas import tpu as pltpu

EPS = 1e-5
NEG_SLOPE = 0.01  # PyTorch LeakyReLU default


# ---------------------------------------------------------------------------
# Host-side (numpy, one-time) constant folding
# ---------------------------------------------------------------------------
def _fold_conv_weights(w, W_in, Wo, s, p):
    """Fold (Cout, Cin, kh, kw) conv weights into one (kh*W_in*Cin, Wo*Cout) matrix.

    Rows are ordered (ki, w, cin) to match the gathered activation slabs; columns are
    (ow, cout) to match the next layer's (w, c) activation layout.  The width gather
    (stride + zero padding in w) is folded in via per-kj selector matrices."""
    w = np.asarray(w, np.float32)
    Cout, Cin, kh, kw = w.shape
    blocks = []
    for ki in range(kh):
        acc = np.zeros((W_in * Cin, Wo * Cout), np.float32)
        for kj in range(kw):
            sel = np.zeros((W_in, Wo), np.float32)
            for ow in range(Wo):
                col = s * ow + kj - p
                if 0 <= col < W_in:
                    sel[col, ow] = 1.0
            acc += np.kron(sel, w[:, :, ki, kj].T)
        blocks.append(acc)
    return np.concatenate(blocks, axis=0)  # (kh*W_in*Cin, Wo*Cout)


def _norm_constants(B, Ho, Wo, Cout):
    """Constant matrices for per-(sample, channel) InstanceNorm on the
    (rows=(b,h), cols=(w,c)) layout: stats averaging (lavg2, ravg) and scale/shift
    broadcast (lexp2, rexp)."""
    rows = B * Ho
    WC = Wo * Cout
    lavg2 = np.zeros((2 * B, 2 * rows), np.float32)
    lexp2 = np.zeros((2 * rows, 2 * B), np.float32)
    for j in range(2):            # j=0: y, j=1: y*y  (stacked along sublanes)
        for b in range(B):
            lavg2[j * B + b, j * rows + b * Ho:j * rows + (b + 1) * Ho] = 1.0 / (Ho * Wo)
            lexp2[j * rows + b * Ho:j * rows + (b + 1) * Ho, j * B + b] = 1.0
    ravg = np.zeros((WC, Cout), np.float32)
    rexp = np.zeros((Cout, WC), np.float32)
    for wq in range(Wo):
        for c in range(Cout):
            ravg[wq * Cout + c, c] = 1.0
            rexp[c, wq * Cout + c] = 1.0
    return lavg2, ravg, lexp2, rexp


def _prepare(params, input_shape):
    """One-time host prep: per-layer folded weights + norm constants + geometry."""
    B, C0, H0, W0 = input_shape
    weights = [np.asarray(w, np.float32) for w in list(params["blocks"]) + [params["end"]]]

    consts, layers, scratch_shapes = [], [], []
    H, W, Cin = H0, W0, C0
    for i, w in enumerate(weights):
        is_end = i == len(weights) - 1
        Cout, _, kh, kw = w.shape
        s, p = (1, 0) if is_end else (2, 1)
        Ho = (H + 2 * p - kh) // s + 1
        Wo = (W + 2 * p - kw) // s + 1
        if i > 0:
            # Padded (in h) inter-layer activation scratch: (B*(H + 2p), W*Cin).
            scratch_shapes.append((B * (H + 2 * p), W * Cin))
        ci = len(consts)
        consts.append(jnp.asarray(_fold_conv_weights(w, W, Wo, s, p)))
        if not is_end:
            for c in _norm_constants(B, Ho, Wo, Cout):
                consts.append(jnp.asarray(c))
        layers.append(dict(k=kh, s=s, p=p, H=H, W=W, Cin=Cin, Ho=Ho, Wo=Wo,
                           Cout=Cout, has_norm=not is_end, const_idx=ci))
        H, W, Cin = Ho, Wo, Cout
    return consts, tuple(layers), tuple(scratch_shapes)


# ---------------------------------------------------------------------------
# Fused Pallas kernel: all conv blocks + InstanceNorm + LeakyReLU + final conv
# ---------------------------------------------------------------------------
def _encoder_kernel(*refs, layers, batch, n_consts):
    """refs = (x_pad, *constants, out, *act_scratches).

    x_pad : (B*(H0+2), W0*C0)  input in (b,h)x(w,c) layout with zero pad rows
    out   : (B*Ho_L, Wo_L*Cout_L)  (== (B, z_dim) for to_1x1=True)
    act_scratches : padded inter-layer activations (one per non-first layer input)
    """
    x_ref = refs[0]
    const = refs[1:1 + n_consts]
    out_ref = refs[1 + n_consts]
    acts = refs[2 + n_consts:]

    # Zero the inter-layer scratches once so their "same"-padding rows stay zero.
    for a in acts:
        a[...] = jnp.zeros_like(a)

    src = x_ref
    n_layers = len(layers)
    for li, L in enumerate(layers):
        k, s = L["k"], L["s"]
        Ho, Wo, Cout = L["Ho"], L["Wo"], L["Cout"]
        Hp = L["H"] + 2 * L["p"]          # padded rows per sample in `src`

        # ---- gather: one (B*Ho, k*W*Cin) operand via strided sublane reads ----
        slabs = []
        for ki in range(k):
            parts = []
            for b in range(batch):
                start = b * Hp + ki       # padded row of (oh=0, ki); stride s over oh
                idx = pl.ds(start, Ho, stride=s) if s > 1 else pl.ds(start, Ho)
                parts.append(src[idx, :])
            slabs.append(parts[0] if batch == 1 else jnp.concatenate(parts, axis=0))
        g = slabs[0] if k == 1 else jnp.concatenate(slabs, axis=1)

        ci = L["const_idx"]
        # ---- convolution: ONE MXU matmul per layer (K = k*W*Cin) ----
        y = jnp.dot(g, const[ci][...], preferred_element_type=jnp.float32)  # (B*Ho, Wo*Cout)

        if L["has_norm"]:
            lavg2 = const[ci + 1][...]
            ravg = const[ci + 2][...]
            lexp2 = const[ci + 3][...]
            rexp = const[ci + 4][...]
            rows = batch * Ho

            # Stats: mean and E[y^2] per (sample, channel) from one stacked dot pair.
            ycat = jnp.concatenate([y, y * y], axis=0)                       # (2*B*Ho, WC)
            stats = jnp.dot(jnp.dot(lavg2, ycat, preferred_element_type=jnp.float32),
                            ravg, preferred_element_type=jnp.float32)        # (2B, Cout)
            mean = stats[:batch, :]
            msq = stats[batch:, :]
            var = jnp.maximum(msq - mean * mean, 0.0)
            inv = lax.rsqrt(var + EPS)

            # Broadcast scale/shift back to (B*Ho, Wo*Cout) with one stacked dot pair.
            sb = jnp.concatenate([inv, -mean * inv], axis=0)                 # (2B, Cout)
            f = jnp.dot(lexp2, jnp.dot(sb, rexp, preferred_element_type=jnp.float32),
                        preferred_element_type=jnp.float32)                  # (2*B*Ho, WC)
            yn = y * f[:rows, :] + f[rows:, :]
            y = jnp.where(yn > 0, yn, NEG_SLOPE * yn)                        # LeakyReLU(0.01)

        if li == n_layers - 1:
            out_ref[...] = y
        else:
            # Write into the interior rows of the next layer's padded input scratch.
            nxt = layers[li + 1]
            dst = acts[li]
            hp_next = nxt["H"] + 2 * nxt["p"]
            for b in range(batch):
                dst[pl.ds(b * hp_next + nxt["p"], Ho), :] = y[b * Ho:(b + 1) * Ho, :]
            src = dst


# ---------------------------------------------------------------------------
# Builder: fold constants once (host), return a jitted forward fn
# ---------------------------------------------------------------------------
def build_encoder_forward(params, input_shape):
    B, C0, H0, W0 = input_shape
    consts, layers, scratch_shapes = _prepare(params, input_shape)
    last = layers[-1]
    out_rows = B * last["Ho"]
    out_cols = last["Wo"] * last["Cout"]
    p0 = layers[0]["p"]

    kernel = functools.partial(_encoder_kernel, layers=layers, batch=B,
                               n_consts=len(consts))
    call = pl.pallas_call(
        kernel,
        out_shape=jax.ShapeDtypeStruct((out_rows, out_cols), jnp.float32),
        scratch_shapes=[pltpu.VMEM(s, jnp.float32) for s in scratch_shapes],
    )

    @jax.jit
    def forward(x):
        # (B, C, H, W) -> (B*(H+2p), W*C): (b,h) rows x (w,c) cols, zero pad rows in h.
        xt = jnp.transpose(x, (0, 2, 3, 1)).reshape(B, H0, W0 * C0).astype(jnp.float32)
        xp = jnp.pad(xt, ((0, 0), (p0, p0), (0, 0))).reshape(B * (H0 + 2 * p0), W0 * C0)
        out = call(xp, *consts)
        # (B*Ho, Wo*Z) -> (B, Z, Ho, Wo)  (== (B, Z, 1, 1) for to_1x1=True)
        return out.reshape(B, last["Ho"], last["Wo"], last["Cout"]).transpose(0, 3, 1, 2)

    return forward


# ---------------------------------------------------------------------------
# Pure-JAX reference (for correctness check)
# ---------------------------------------------------------------------------
def _ref_block(x, w):
    y = lax.conv_general_dilated(
        x, w, window_strides=(2, 2), padding=((1, 1), (1, 1)),
        dimension_numbers=("NCHW", "OIHW", "NCHW"),
        precision=lax.Precision.HIGHEST)
    mean = y.mean(axis=(2, 3), keepdims=True)
    var = ((y - mean) ** 2).mean(axis=(2, 3), keepdims=True)
    yn = (y - mean) / jnp.sqrt(var + EPS)
    return jnp.where(yn > 0, yn, NEG_SLOPE * yn)


def _ref_forward(x, params):
    out = x
    for w in params["blocks"]:
        out = _ref_block(out, w)
    out = lax.conv_general_dilated(
        out, params["end"], window_strides=(1, 1), padding="VALID",
        dimension_numbers=("NCHW", "OIHW", "NCHW"),
        precision=lax.Precision.HIGHEST)
    return out


# ---------------------------------------------------------------------------
# Main
# ---------------------------------------------------------------------------
if __name__ == "__main__":
    # Small Encoder config: image_size=(4,16,16), h_size=(8,16,32), z_dim=32
    B = 2
    image_size = (4, 16, 16)
    h_size = (8, 16, 32)
    z_dim = 32

    key = jax.random.PRNGKey(0)
    kx, k0, k1, k2, k3 = jax.random.split(key, 5)

    x = jax.random.normal(kx, (B,) + image_size, dtype=jnp.float32)

    def init_w(k, cout, cin, kh, kw):
        fan_in = cin * kh * kw
        return jax.random.normal(k, (cout, cin, kh, kw), jnp.float32) * (1.0 / fan_in) ** 0.5

    # start + middle blocks (each: Conv k4 s2 p1, bias=False)
    w_start = init_w(k0, h_size[0], image_size[0], 4, 4)
    w_mid1 = init_w(k1, h_size[1], h_size[0], 4, 4)
    w_mid2 = init_w(k2, h_size[2], h_size[1], 4, 4)
    # after 3 stride-2 convs: 16 -> 8 -> 4 -> 2 ; end kernel = (2, 2), stride 1, pad 0
    w_end = init_w(k3, z_dim, h_size[2], 2, 2)

    params = {"blocks": [w_start, w_mid1, w_mid2], "end": w_end}

    encoder = build_encoder_forward(params, (B,) + image_size)
    out = jax.block_until_ready(encoder(x))
    assert out.shape == (B, z_dim, 1, 1), out.shape

    ref = jax.block_until_ready(_ref_forward(x, params))
    max_err = float(jnp.max(jnp.abs(out - ref)))
    assert jnp.allclose(out, ref, rtol=2e-3, atol=2e-3), max_err

    print("KERNEL_OK")
</pallas_src>

<mosaic_0001>
module attributes {stable_mosaic.version = 11 : i64} {
  func.func @_encoder_kernel(%arg0: memref<36x64xf32, #tpu.memory_space<vmem>>, %arg1: memref<256x64xf32, #tpu.memory_space<vmem>>, %arg2: memref<4x32xf32, #tpu.memory_space<vmem>>, %arg3: memref<64x8xf32, #tpu.memory_space<vmem>>, %arg4: memref<32x4xf32, #tpu.memory_space<vmem>>, %arg5: memref<8x64xf32, #tpu.memory_space<vmem>>, %arg6: memref<256x64xf32, #tpu.memory_space<vmem>>, %arg7: memref<4x16xf32, #tpu.memory_space<vmem>>, %arg8: memref<64x16xf32, #tpu.memory_space<vmem>>, %arg9: memref<16x4xf32, #tpu.memory_space<vmem>>, %arg10: memref<16x64xf32, #tpu.memory_space<vmem>>, %arg11: memref<256x64xf32, #tpu.memory_space<vmem>>, %arg12: memref<4x8xf32, #tpu.memory_space<vmem>>, %arg13: memref<64x32xf32, #tpu.memory_space<vmem>>, %arg14: memref<8x4xf32, #tpu.memory_space<vmem>>, %arg15: memref<32x64xf32, #tpu.memory_space<vmem>>, %arg16: memref<128x32xf32, #tpu.memory_space<vmem>>, %arg17: memref<2x32xf32, #tpu.memory_space<vmem>>, %arg18: memref<20x64xf32, #tpu.memory_space<vmem>>, %arg19: memref<12x64xf32, #tpu.memory_space<vmem>>, %arg20: memref<4x64xf32, #tpu.memory_space<vmem>>) attributes {dimension_semantics = [], scalar_prefetch = 0 : i64, scratch_operands = 3 : i64, tpu.core_type = #tpu.core_type<tc>} {
    %cst = arith.constant 0.000000e+00 : f32
    %0 = vector.broadcast %cst : f32 to vector<20x64xf32>
    %c0 = arith.constant 0 : index
    %c0_0 = arith.constant 0 : index
    %1 = vector.load %arg18[%c0, %c0_0] : memref<20x64xf32, #tpu.memory_space<vmem>>, vector<20x64xf32>
    tpu.vector_store %arg18[%c0, %c0_0], %0 {strides = array<i32>} : memref<20x64xf32, #tpu.memory_space<vmem>>, vector<20x64xf32>,
    %cst_1 = arith.constant 0.000000e+00 : f32
    %2 = vector.broadcast %cst_1 : f32 to vector<12x64xf32>
    %c0_2 = arith.constant 0 : index
    %c0_3 = arith.constant 0 : index
    %3 = vector.load %arg19[%c0_2, %c0_3] : memref<12x64xf32, #tpu.memory_space<vmem>>, vector<12x64xf32>
    tpu.vector_store %arg19[%c0_2, %c0_3], %2 {strides = array<i32>} : memref<12x64xf32, #tpu.memory_space<vmem>>, vector<12x64xf32>,
    %cst_4 = arith.constant 0.000000e+00 : f32
    %4 = vector.broadcast %cst_4 : f32 to vector<4x64xf32>
    %c0_5 = arith.constant 0 : index
    %c0_6 = arith.constant 0 : index
    %5 = vector.load %arg20[%c0_5, %c0_6] : memref<4x64xf32, #tpu.memory_space<vmem>>, vector<4x64xf32>
    tpu.vector_store %arg20[%c0_5, %c0_6], %4 {strides = array<i32>} : memref<4x64xf32, #tpu.memory_space<vmem>>, vector<4x64xf32>,
    %c0_7 = arith.constant 0 : index
    %c0_8 = arith.constant 0 : index
    %6 = tpu.strided_load %arg0[%c0_7, %c0_8] {strides = array<i32: 2, 1>} : memref<36x64xf32, #tpu.memory_space<vmem>>, vector<8x64xf32>
    %c18 = arith.constant 18 : index
    %c0_9 = arith.constant 0 : index
    %7 = tpu.strided_load %arg0[%c18, %c0_9] {strides = array<i32: 2, 1>} : memref<36x64xf32, #tpu.memory_space<vmem>>, vector<8x64xf32>
    %8 = tpu.concatenate %6, %7 in 0 : vector<8x64xf32>, vector<8x64xf32> -> vector<16x64xf32>
    %c1 = arith.constant 1 : index
    %c0_10 = arith.constant 0 : index
    %9 = tpu.strided_load %arg0[%c1, %c0_10] {strides = array<i32: 2, 1>} : memref<36x64xf32, #tpu.memory_space<vmem>>, vector<8x64xf32>
    %c19 = arith.constant 19 : index
    %c0_11 = arith.constant 0 : index
    %10 = tpu.strided_load %arg0[%c19, %c0_11] {strides = array<i32: 2, 1>} : memref<36x64xf32, #tpu.memory_space<vmem>>, vector<8x64xf32>
    %11 = tpu.concatenate %9, %10 in 0 : vector<8x64xf32>, vector<8x64xf32> -> vector<16x64xf32>
    %c2 = arith.constant 2 : index
    %c0_12 = arith.constant 0 : index
    %12 = tpu.strided_load %arg0[%c2, %c0_12] {strides = array<i32: 2, 1>} : memref<36x64xf32, #tpu.memory_space<vmem>>, vector<8x64xf32>
    %c20 = arith.constant 20 : index
    %c0_13 = arith.constant 0 : index
    %13 = tpu.strided_load %arg0[%c20, %c0_13] {strides = array<i32: 2, 1>} : memref<36x64xf32, #tpu.memory_space<vmem>>, vector<8x64xf32>
    %14 = tpu.concatenate %12, %13 in 0 : vector<8x64xf32>, vector<8x64xf32> -> vector<16x64xf32>
    %c3 = arith.constant 3 : index
    %c0_14 = arith.constant 0 : index
    %15 = tpu.strided_load %arg0[%c3, %c0_14] {strides = array<i32: 2, 1>} : memref<36x64xf32, #tpu.memory_space<vmem>>, vector<8x64xf32>
    %c21 = arith.constant 21 : index
    %c0_15 = arith.constant 0 : index
    %16 = tpu.strided_load %arg0[%c21, %c0_15] {strides = array<i32: 2, 1>} : memref<36x64xf32, #tpu.memory_space<vmem>>, vector<8x64xf32>
    %17 = tpu.concatenate %15, %16 in 0 : vector<8x64xf32>, vector<8x64xf32> -> vector<16x64xf32>
    %18 = tpu.concatenate %8, %11, %14, %17 in 1 : vector<16x64xf32>, vector<16x64xf32>, vector<16x64xf32>, vector<16x64xf32> -> vector<16x256xf32>
    %c0_16 = arith.constant 0 : index
    %c0_17 = arith.constant 0 : index
    %19 = vector.load %arg1[%c0_16, %c0_17] : memref<256x64xf32, #tpu.memory_space<vmem>>, vector<256x64xf32>
    %cst_18 = arith.constant dense<0.000000e+00> : vector<16x64xf32>
    %20 = tpu.matmul %18, %19, %cst_18 {dimension_numbers = #tpu.dot_dimension_numbers<[1], [0], [0], [1], [0, 0, 1, 1], [], []>} : vector<16x256xf32>, vector<256x64xf32>, vector<16x64xf32> -> vector<16x64xf32>
    %c0_19 = arith.constant 0 : index
    %c0_20 = arith.constant 0 : index
    %21 = vector.load %arg2[%c0_19, %c0_20] : memref<4x32xf32, #tpu.memory_space<vmem>>, vector<4x32xf32>
    %c0_21 = arith.constant 0 : index
    %c0_22 = arith.constant 0 : index
    %22 = vector.load %arg3[%c0_21, %c0_22] : memref<64x8xf32, #tpu.memory_space<vmem>>, vector<64x8xf32>
    %c0_23 = arith.constant 0 : index
    %c0_24 = arith.constant 0 : index
    %23 = vector.load %arg4[%c0_23, %c0_24] : memref<32x4xf32, #tpu.memory_space<vmem>>, vector<32x4xf32>
    %c0_25 = arith.constant 0 : index
    %c0_26 = arith.constant 0 : index
    %24 = vector.load %arg5[%c0_25, %c0_26] : memref<8x64xf32, #tpu.memory_space<vmem>>, vector<8x64xf32>
    %25 = arith.mulf %20, %20 : vector<16x64xf32>
    %26 = tpu.concatenate %20, %25 in 0 : vector<16x64xf32>, vector<16x64xf32> -> vector<32x64xf32>
    %cst_27 = arith.constant dense<0.000000e+00> : vector<4x64xf32>
    %27 = tpu.matmul %21, %26, %cst_27 {dimension_numbers = #tpu.dot_dimension_numbers<[1], [0], [0], [1], [0, 0, 1, 1], [], []>} : vector<4x32xf32>, vector<32x64xf32>, vector<4x64xf32> -> vector<4x64xf32>
    %cst_28 = arith.constant dense<0.000000e+00> : vector<4x8xf32>
    %28 = tpu.matmul %27, %22, %cst_28 {dimension_numbers = #tpu.dot_dimension_numbers<[1], [0], [0], [1], [0, 0, 1, 1], [], []>} : vector<4x64xf32>, vector<64x8xf32>, vector<4x8xf32> -> vector<4x8xf32>
    %29 = vector.extract_strided_slice %28 {offsets = [0, 0], sizes = [2, 8], strides = [1, 1]} : vector<4x8xf32> to vector<2x8xf32>
    %30 = vector.extract_strided_slice %28 {offsets = [2, 0], sizes = [2, 8], strides = [1, 1]} : vector<4x8xf32> to vector<2x8xf32>
    %31 = arith.mulf %29, %29 : vector<2x8xf32>
    %32 = arith.subf %30, %31 : vector<2x8xf32>
    %cst_29 = arith.constant 0.000000e+00 : f32
    %33 = vector.broadcast %cst_29 : f32 to vector<2x8xf32>
    %34 = arith.maximumf %32, %33 : vector<2x8xf32>
    %cst_30 = arith.constant 9.99999974E-6 : f32
    %35 = vector.broadcast %cst_30 : f32 to vector<2x8xf32>
    %36 = arith.addf %34, %35 : vector<2x8xf32>
    %37 = math.rsqrt %36 : vector<2x8xf32>
    %cst_31 = arith.constant 0.000000e+00 : f32
    %38 = vector.broadcast %cst_31 : f32 to vector<2x8xf32>
    %39 = arith.subf %38, %29 : vector<2x8xf32>
    %40 = arith.mulf %39, %37 : vector<2x8xf32>
    %41 = tpu.concatenate %37, %40 in 0 : vector<2x8xf32>, vector<2x8xf32> -> vector<4x8xf32>
    %cst_32 = arith.constant dense<0.000000e+00> : vector<4x64xf32>
    %42 = tpu.matmul %41, %24, %cst_32 {dimension_numbers = #tpu.dot_dimension_numbers<[1], [0], [0], [1], [0, 0, 1, 1], [], []>} : vector<4x8xf32>, vector<8x64xf32>, vector<4x64xf32> -> vector<4x64xf32>
    %cst_33 = arith.constant dense<0.000000e+00> : vector<32x64xf32>
    %43 = tpu.matmul %23, %42, %cst_33 {dimension_numbers = #tpu.dot_dimension_numbers<[1], [0], [0], [1], [0, 0, 1, 1], [], []>} : vector<32x4xf32>, vector<4x64xf32>, vector<32x64xf32> -> vector<32x64xf32>
    %44 = vector.extract_strided_slice %43 {offsets = [0, 0], sizes = [16, 64], strides = [1, 1]} : vector<32x64xf32> to vector<16x64xf32>
    %45 = arith.mulf %20, %44 : vector<16x64xf32>
    %46 = vector.extract_strided_slice %43 {offsets = [16, 0], sizes = [16, 64], strides = [1, 1]} : vector<32x64xf32> to vector<16x64xf32>
    %47 = arith.addf %45, %46 : vector<16x64xf32>
    %cst_34 = arith.constant 0.000000e+00 : f32
    %48 = vector.broadcast %cst_34 : f32 to vector<16x64xf32>
    %49 = arith.cmpf ogt, %47, %48 : vector<16x64xf32>
    %cst_35 = arith.constant 0.00999999977 : f32
    %50 = vector.broadcast %cst_35 : f32 to vector<16x64xf32>
    %51 = arith.mulf %50, %47 : vector<16x64xf32>
    %52 = arith.select %49, %47, %51 : vector<16x64xi1>, vector<16x64xf32>
    %53 = vector.extract_strided_slice %52 {offsets = [0, 0], sizes = [8, 64], strides = [1, 1]} : vector<16x64xf32> to vector<8x64xf32>
    %c1_36 = arith.constant 1 : index
    %c0_37 = arith.constant 0 : index
    %54 = vector.load %arg18[%c1_36, %c0_37] : memref<20x64xf32, #tpu.memory_space<vmem>>, vector<8x64xf32>
    tpu.vector_store %arg18[%c1_36, %c0_37], %53 {strides = array<i32>} : memref<20x64xf32, #tpu.memory_space<vmem>>, vector<8x64xf32>,
    %55 = vector.extract_strided_slice %52 {offsets = [8, 0], sizes = [8, 64], strides = [1, 1]} : vector<16x64xf32> to vector<8x64xf32>
    %c11 = arith.constant 11 : index
    %c0_38 = arith.constant 0 : index
    %56 = vector.load %arg18[%c11, %c0_38] : memref<20x64xf32, #tpu.memory_space<vmem>>, vector<8x64xf32>
    tpu.vector_store %arg18[%c11, %c0_38], %55 {strides = array<i32>} : memref<20x64xf32, #tpu.memory_space<vmem>>, vector<8x64xf32>,
    %c0_39 = arith.constant 0 : index
    %c0_40 = arith.constant 0 : index
    %57 = tpu.strided_load %arg18[%c0_39, %c0_40] {strides = array<i32: 2, 1>} : memref<20x64xf32, #tpu.memory_space<vmem>>, vector<4x64xf32>
    %c10 = arith.constant 10 : index
    %c0_41 = arith.constant 0 : index
    %58 = tpu.strided_load %arg18[%c10, %c0_41] {strides = array<i32: 2, 1>} : memref<20x64xf32, #tpu.memory_space<vmem>>, vector<4x64xf32>
    %59 = tpu.concatenate %57, %58 in 0 : vector<4x64xf32>, vector<4x64xf32> -> vector<8x64xf32>
    %c1_42 = arith.constant 1 : index
    %c0_43 = arith.constant 0 : index
    %60 = tpu.strided_load %arg18[%c1_42, %c0_43] {strides = array<i32: 2, 1>} : memref<20x64xf32, #tpu.memory_space<vmem>>, vector<4x64xf32>
    %c11_44 = arith.constant 11 : index
    %c0_45 = arith.constant 0 : index
    %61 = tpu.strided_load %arg18[%c11_44, %c0_45] {strides = array<i32: 2, 1>} : memref<20x64xf32, #tpu.memory_space<vmem>>, vector<4x64xf32>
    %62 = tpu.concatenate %60, %61 in 0 : vector<4x64xf32>, vector<4x64xf32> -> vector<8x64xf32>
    %c2_46 = arith.constant 2 : index
    %c0_47 = arith.constant 0 : index
    %63 = tpu.strided_load %arg18[%c2_46, %c0_47] {strides = array<i32: 2, 1>} : memref<20x64xf32, #tpu.memory_space<vmem>>, vector<4x64xf32>
    %c12 = arith.constant 12 : index
    %c0_48 = arith.constant 0 : index
    %64 = tpu.strided_load %arg18[%c12, %c0_48] {strides = array<i32: 2, 1>} : memref<20x64xf32, #tpu.memory_space<vmem>>, vector<4x64xf32>
    %65 = tpu.concatenate %63, %64 in 0 : vector<4x64xf32>, vector<4x64xf32> -> vector<8x64xf32>
    %c3_49 = arith.constant 3 : index
    %c0_50 = arith.constant 0 : index
    %66 = tpu.strided_load %arg18[%c3_49, %c0_50] {strides = array<i32: 2, 1>} : memref<20x64xf32, #tpu.memory_space<vmem>>, vector<4x64xf32>
    %c13 = arith.constant 13 : index
    %c0_51 = arith.constant 0 : index
    %67 = tpu.strided_load %arg18[%c13, %c0_51] {strides = array<i32: 2, 1>} : memref<20x64xf32, #tpu.memory_space<vmem>>, vector<4x64xf32>
    %68 = tpu.concatenate %66, %67 in 0 : vector<4x64xf32>, vector<4x64xf32> -> vector<8x64xf32>
    %69 = tpu.concatenate %59, %62, %65, %68 in 1 : vector<8x64xf32>, vector<8x64xf32>, vector<8x64xf32>, vector<8x64xf32> -> vector<8x256xf32>
    %c0_52 = arith.constant 0 : index
    %c0_53 = arith.constant 0 : index
    %70 = vector.load %arg6[%c0_52, %c0_53] : memref<256x64xf32, #tpu.memory_space<vmem>>, vector<256x64xf32>
    %cst_54 = arith.constant dense<0.000000e+00> : vector<8x64xf32>
    %71 = tpu.matmul %69, %70, %cst_54 {dimension_numbers = #tpu.dot_dimension_numbers<[1], [0], [0], [1], [0, 0, 1, 1], [], []>} : vector<8x256xf32>, vector<256x64xf32>, vector<8x64xf32> -> vector<8x64xf32>
    %c0_55 = arith.constant 0 : index
    %c0_56 = arith.constant 0 : index
    %72 = vector.load %arg7[%c0_55, %c0_56] : memref<4x16xf32, #tpu.memory_space<vmem>>, vector<4x16xf32>
    %c0_57 = arith.constant 0 : index
    %c0_58 = arith.constant 0 : index
    %73 = vector.load %arg8[%c0_57, %c0_58] : memref<64x16xf32, #tpu.memory_space<vmem>>, vector<64x16xf32>
    %c0_59 = arith.constant 0 : index
    %c0_60 = arith.constant 0 : index
    %74 = vector.load %arg9[%c0_59, %c0_60] : memref<16x4xf32, #tpu.memory_space<vmem>>, vector<16x4xf32>
    %c0_61 = arith.constant 0 : index
    %c0_62 = arith.constant 0 : index
    %75 = vector.load %arg10[%c0_61, %c0_62] : memref<16x64xf32, #tpu.memory_space<vmem>>, vector<16x64xf32>
    %76 = arith.mulf %71, %71 : vector<8x64xf32>
    %77 = tpu.concatenate %71, %76 in 0 : vector<8x64xf32>, vector<8x64xf32> -> vector<16x64xf32>
    %cst_63 = arith.constant dense<0.000000e+00> : vector<4x64xf32>
    %78 = tpu.matmul %72, %77, %cst_63 {dimension_numbers = #tpu.dot_dimension_numbers<[1], [0], [0], [1], [0, 0, 1, 1], [], []>} : vector<4x16xf32>, vector<16x64xf32>, vector<4x64xf32> -> vector<4x64xf32>
    %cst_64 = arith.constant dense<0.000000e+00> : vector<4x16xf32>
    %79 = tpu.matmul %78, %73, %cst_64 {dimension_numbers = #tpu.dot_dimension_numbers<[1], [0], [0], [1], [0, 0, 1, 1], [], []>} : vector<4x64xf32>, vector<64x16xf32>, vector<4x16xf32> -> vector<4x16xf32>
    %80 = vector.extract_strided_slice %79 {offsets = [0, 0], sizes = [2, 16], strides = [1, 1]} : vector<4x16xf32> to vector<2x16xf32>
    %81 = vector.extract_strided_slice %79 {offsets = [2, 0], sizes = [2, 16], strides = [1, 1]} : vector<4x16xf32> to vector<2x16xf32>
    %82 = arith.mulf %80, %80 : vector<2x16xf32>
    %83 = arith.subf %81, %82 : vector<2x16xf32>
    %cst_65 = arith.constant 0.000000e+00 : f32
    %84 = vector.broadcast %cst_65 : f32 to vector<2x16xf32>
    %85 = arith.maximumf %83, %84 : vector<2x16xf32>
    %cst_66 = arith.constant 9.99999974E-6 : f32
    %86 = vector.broadcast %cst_66 : f32 to vector<2x16xf32>
    %87 = arith.addf %85, %86 : vector<2x16xf32>
    %88 = math.rsqrt %87 : vector<2x16xf32>
    %cst_67 = arith.constant 0.000000e+00 : f32
    %89 = vector.broadcast %cst_67 : f32 to vector<2x16xf32>
    %90 = arith.subf %89, %80 : vector<2x16xf32>
    %91 = arith.mulf %90, %88 : vector<2x16xf32>
    %92 = tpu.concatenate %88, %91 in 0 : vector<2x16xf32>, vector<2x16xf32> -> vector<4x16xf32>
    %cst_68 = arith.constant dense<0.000000e+00> : vector<4x64xf32>
    %93 = tpu.matmul %92, %75, %cst_68 {dimension_numbers = #tpu.dot_dimension_numbers<[1], [0], [0], [1], [0, 0, 1, 1], [], []>} : vector<4x16xf32>, vector<16x64xf32>, vector<4x64xf32> -> vector<4x64xf32>
    %cst_69 = arith.constant dense<0.000000e+00> : vector<16x64xf32>
    %94 = tpu.matmul %74, %93, %cst_69 {dimension_numbers = #tpu.dot_dimension_numbers<[1], [0], [0], [1], [0, 0, 1, 1], [], []>} : vector<16x4xf32>, vector<4x64xf32>, vector<16x64xf32> -> vector<16x64xf32>
    %95 = vector.extract_strided_slice %94 {offsets = [0, 0], sizes = [8, 64], strides = [1, 1]} : vector<16x64xf32> to vector<8x64xf32>
    %96 = arith.mulf %71, %95 : vector<8x64xf32>
    %97 = vector.extract_strided_slice %94 {offsets = [8, 0], sizes = [8, 64], strides = [1, 1]} : vector<16x64xf32> to vector<8x64xf32>
    %98 = arith.addf %96, %97 : vector<8x64xf32>
    %cst_70 = arith.constant 0.000000e+00 : f32
    %99 = vector.broadcast %cst_70 : f32 to vector<8x64xf32>
    %100 = arith.cmpf ogt, %98, %99 : vector<8x64xf32>
    %cst_71 = arith.constant 0.00999999977 : f32
    %101 = vector.broadcast %cst_71 : f32 to vector<8x64xf32>
    %102 = arith.mulf %101, %98 : vector<8x64xf32>
    %103 = arith.select %100, %98, %102 : vector<8x64xi1>, vector<8x64xf32>
    %104 = vector.extract_strided_slice %103 {offsets = [0, 0], sizes = [4, 64], strides = [1, 1]} : vector<8x64xf32> to vector<4x64xf32>
    %c1_72 = arith.constant 1 : index
    %c0_73 = arith.constant 0 : index
    %105 = vector.load %arg19[%c1_72, %c0_73] : memref<12x64xf32, #tpu.memory_space<vmem>>, vector<4x64xf32>
    tpu.vector_store %arg19[%c1_72, %c0_73], %104 {strides = array<i32>} : memref<12x64xf32, #tpu.memory_space<vmem>>, vector<4x64xf32>,
    %106 = vector.extract_strided_slice %103 {offsets = [4, 0], sizes = [4, 64], strides = [1, 1]} : vector<8x64xf32> to vector<4x64xf32>
    %c7 = arith.constant 7 : index
    %c0_74 = arith.constant 0 : index
    %107 = vector.load %arg19[%c7, %c0_74] : memref<12x64xf32, #tpu.memory_space<vmem>>, vector<4x64xf32>
    tpu.vector_store %arg19[%c7, %c0_74], %106 {strides = array<i32>} : memref<12x64xf32, #tpu.memory_space<vmem>>, vector<4x64xf32>,
    %c0_75 = arith.constant 0 : index
    %c0_76 = arith.constant 0 : index
    %108 = tpu.strided_load %arg19[%c0_75, %c0_76] {strides = array<i32: 2, 1>} : memref<12x64xf32, #tpu.memory_space<vmem>>, vector<2x64xf32>
    %c6 = arith.constant 6 : index
    %c0_77 = arith.constant 0 : index
    %109 = tpu.strided_load %arg19[%c6, %c0_77] {strides = array<i32: 2, 1>} : memref<12x64xf32, #tpu.memory_space<vmem>>, vector<2x64xf32>
    %110 = tpu.concatenate %108, %109 in 0 : vector<2x64xf32>, vector<2x64xf32> -> vector<4x64xf32>
    %c1_78 = arith.constant 1 : index
    %c0_79 = arith.constant 0 : index
    %111 = tpu.strided_load %arg19[%c1_78, %c0_79] {strides = array<i32: 2, 1>} : memref<12x64xf32, #tpu.memory_space<vmem>>, vector<2x64xf32>
    %c7_80 = arith.constant 7 : index
    %c0_81 = arith.constant 0 : index
    %112 = tpu.strided_load %arg19[%c7_80, %c0_81] {strides = array<i32: 2, 1>} : memref<12x64xf32, #tpu.memory_space<vmem>>, vector<2x64xf32>
    %113 = tpu.concatenate %111, %112 in 0 : vector<2x64xf32>, vector<2x64xf32> -> vector<4x64xf32>
    %c2_82 = arith.constant 2 : index
    %c0_83 = arith.constant 0 : index
    %114 = tpu.strided_load %arg19[%c2_82, %c0_83] {strides = array<i32: 2, 1>} : memref<12x64xf32, #tpu.memory_space<vmem>>, vector<2x64xf32>
    %c8 = arith.constant 8 : index
    %c0_84 = arith.constant 0 : index
    %115 = tpu.strided_load %arg19[%c8, %c0_84] {strides = array<i32: 2, 1>} : memref<12x64xf32, #tpu.memory_space<vmem>>, vector<2x64xf32>
    %116 = tpu.concatenate %114, %115 in 0 : vector<2x64xf32>, vector<2x64xf32> -> vector<4x64xf32>
    %c3_85 = arith.constant 3 : index
    %c0_86 = arith.constant 0 : index
    %117 = tpu.strided_load %arg19[%c3_85, %c0_86] {strides = array<i32: 2, 1>} : memref<12x64xf32, #tpu.memory_space<vmem>>, vector<2x64xf32>
    %c9 = arith.constant 9 : index
    %c0_87 = arith.constant 0 : index
    %118 = tpu.strided_load %arg19[%c9, %c0_87] {strides = array<i32: 2, 1>} : memref<12x64xf32, #tpu.memory_space<vmem>>, vector<2x64xf32>
    %119 = tpu.concatenate %117, %118 in 0 : vector<2x64xf32>, vector<2x64xf32> -> vector<4x64xf32>
    %120 = tpu.concatenate %110, %113, %116, %119 in 1 : vector<4x64xf32>, vector<4x64xf32>, vector<4x64xf32>, vector<4x64xf32> -> vector<4x256xf32>
    %c0_88 = arith.constant 0 : index
    %c0_89 = arith.constant 0 : index
    %121 = vector.load %arg11[%c0_88, %c0_89] : memref<256x64xf32, #tpu.memory_space<vmem>>, vector<256x64xf32>
    %cst_90 = arith.constant dense<0.000000e+00> : vector<4x64xf32>
    %122 = tpu.matmul %120, %121, %cst_90 {dimension_numbers = #tpu.dot_dimension_numbers<[1], [0], [0], [1], [0, 0, 1, 1], [], []>} : vector<4x256xf32>, vector<256x64xf32>, vector<4x64xf32> -> vector<4x64xf32>
    %c0_91 = arith.constant 0 : index
    %c0_92 = arith.constant 0 : index
    %123 = vector.load %arg12[%c0_91, %c0_92] : memref<4x8xf32, #tpu.memory_space<vmem>>, vector<4x8xf32>
    %c0_93 = arith.constant 0 : index
    %c0_94 = arith.constant 0 : index
    %124 = vector.load %arg13[%c0_93, %c0_94] : memref<64x32xf32, #tpu.memory_space<vmem>>, vector<64x32xf32>
    %c0_95 = arith.constant 0 : index
    %c0_96 = arith.constant 0 : index
    %125 = vector.load %arg14[%c0_95, %c0_96] : memref<8x4xf32, #tpu.memory_space<vmem>>, vector<8x4xf32>
    %c0_97 = arith.constant 0 : index
    %c0_98 = arith.constant 0 : index
    %126 = vector.load %arg15[%c0_97, %c0_98] : memref<32x64xf32, #tpu.memory_space<vmem>>, vector<32x64xf32>
    %127 = arith.mulf %122, %122 : vector<4x64xf32>
    %128 = tpu.concatenate %122, %127 in 0 : vector<4x64xf32>, vector<4x64xf32> -> vector<8x64xf32>
    %cst_99 = arith.constant dense<0.000000e+00> : vector<4x64xf32>
    %129 = tpu.matmul %123, %128, %cst_99 {dimension_numbers = #tpu.dot_dimension_numbers<[1], [0], [0], [1], [0, 0, 1, 1], [], []>} : vector<4x8xf32>, vector<8x64xf32>, vector<4x64xf32> -> vector<4x64xf32>
    %cst_100 = arith.constant dense<0.000000e+00> : vector<4x32xf32>
    %130 = tpu.matmul %129, %124, %cst_100 {dimension_numbers = #tpu.dot_dimension_numbers<[1], [0], [0], [1], [0, 0, 1, 1], [], []>} : vector<4x64xf32>, vector<64x32xf32>, vector<4x32xf32> -> vector<4x32xf32>
    %131 = vector.extract_strided_slice %130 {offsets = [0, 0], sizes = [2, 32], strides = [1, 1]} : vector<4x32xf32> to vector<2x32xf32>
    %132 = vector.extract_strided_slice %130 {offsets = [2, 0], sizes = [2, 32], strides = [1, 1]} : vector<4x32xf32> to vector<2x32xf32>
    %133 = arith.mulf %131, %131 : vector<2x32xf32>
    %134 = arith.subf %132, %133 : vector<2x32xf32>
    %cst_101 = arith.constant 0.000000e+00 : f32
    %135 = vector.broadcast %cst_101 : f32 to vector<2x32xf32>
    %136 = arith.maximumf %134, %135 : vector<2x32xf32>
    %cst_102 = arith.constant 9.99999974E-6 : f32
    %137 = vector.broadcast %cst_102 : f32 to vector<2x32xf32>
    %138 = arith.addf %136, %137 : vector<2x32xf32>
    %139 = math.rsqrt %138 : vector<2x32xf32>
    %cst_103 = arith.constant 0.000000e+00 : f32
    %140 = vector.broadcast %cst_103 : f32 to vector<2x32xf32>
    %141 = arith.subf %140, %131 : vector<2x32xf32>
    %142 = arith.mulf %141, %139 : vector<2x32xf32>
    %143 = tpu.concatenate %139, %142 in 0 : vector<2x32xf32>, vector<2x32xf32> -> vector<4x32xf32>
    %cst_104 = arith.constant dense<0.000000e+00> : vector<4x64xf32>
    %144 = tpu.matmul %143, %126, %cst_104 {dimension_numbers = #tpu.dot_dimension_numbers<[1], [0], [0], [1], [0, 0, 1, 1], [], []>} : vector<4x32xf32>, vector<32x64xf32>, vector<4x64xf32> -> vector<4x64xf32>
    %cst_105 = arith.constant dense<0.000000e+00> : vector<8x64xf32>
    %145 = tpu.matmul %125, %144, %cst_105 {dimension_numbers = #tpu.dot_dimension_numbers<[1], [0], [0], [1], [0, 0, 1, 1], [], []>} : vector<8x4xf32>, vector<4x64xf32>, vector<8x64xf32> -> vector<8x64xf32>
    %146 = vector.extract_strided_slice %145 {offsets = [0, 0], sizes = [4, 64], strides = [1, 1]} : vector<8x64xf32> to vector<4x64xf32>
    %147 = arith.mulf %122, %146 : vector<4x64xf32>
    %148 = vector.extract_strided_slice %145 {offsets = [4, 0], sizes = [4, 64], strides = [1, 1]} : vector<8x64xf32> to vector<4x64xf32>
    %149 = arith.addf %147, %148 : vector<4x64xf32>
    %cst_106 = arith.constant 0.000000e+00 : f32
    %150 = vector.broadcast %cst_106 : f32 to vector<4x64xf32>
    %151 = arith.cmpf ogt, %149, %150 : vector<4x64xf32>
    %cst_107 = arith.constant 0.00999999977 : f32
    %152 = vector.broadcast %cst_107 : f32 to vector<4x64xf32>
    %153 = arith.mulf %152, %149 : vector<4x64xf32>
    %154 = arith.select %151, %149, %153 : vector<4x64xi1>, vector<4x64xf32>
    %155 = vector.extract_strided_slice %154 {offsets = [0, 0], sizes = [2, 64], strides = [1, 1]} : vector<4x64xf32> to vector<2x64xf32>
    %c0_108 = arith.constant 0 : index
    %c0_109 = arith.constant 0 : index
    %156 = vector.load %arg20[%c0_108, %c0_109] : memref<4x64xf32, #tpu.memory_space<vmem>>, vector<2x64xf32>
    tpu.vector_store %arg20[%c0_108, %c0_109], %155 {strides = array<i32>} : memref<4x64xf32, #tpu.memory_space<vmem>>, vector<2x64xf32>,
    %157 = vector.extract_strided_slice %154 {offsets = [2, 0], sizes = [2, 64], strides = [1, 1]} : vector<4x64xf32> to vector<2x64xf32>
    %c2_110 = arith.constant 2 : index
    %c0_111 = arith.constant 0 : index
    %158 = vector.load %arg20[%c2_110, %c0_111] : memref<4x64xf32, #tpu.memory_space<vmem>>, vector<2x64xf32>
    tpu.vector_store %arg20[%c2_110, %c0_111], %157 {strides = array<i32>} : memref<4x64xf32, #tpu.memory_space<vmem>>, vector<2x64xf32>,
    %c0_112 = arith.constant 0 : index
    %c0_113 = arith.constant 0 : index
    %159 = vector.load %arg20[%c0_112, %c0_113] : memref<4x64xf32, #tpu.memory_space<vmem>>, vector<1x64xf32>
    %c2_114 = arith.constant 2 : index
    %c0_115 = arith.constant 0 : index
    %160 = vector.load %arg20[%c2_114, %c0_115] : memref<4x64xf32, #tpu.memory_space<vmem>>, vector<1x64xf32>
    %161 = tpu.concatenate %159, %160 in 0 : vector<1x64xf32>, vector<1x64xf32> -> vector<2x64xf32>
    %c1_116 = arith.constant 1 : index
    %c0_117 = arith.constant 0 : index
    %162 = vector.load %arg20[%c1_116, %c0_117] : memref<4x64xf32, #tpu.memory_space<vmem>>, vector<1x64xf32>
    %c3_118 = arith.constant 3 : index
    %c0_119 = arith.constant 0 : index
    %163 = vector.load %arg20[%c3_118, %c0_119] : memref<4x64xf32, #tpu.memory_space<vmem>>, vector<1x64xf32>
    %164 = tpu.concatenate %162, %163 in 0 : vector<1x64xf32>, vector<1x64xf32> -> vector<2x64xf32>
    %165 = tpu.concatenate %161, %164 in 1 : vector<2x64xf32>, vector<2x64xf32> -> vector<2x128xf32>
    %c0_120 = arith.constant 0 : index
    %c0_121 = arith.constant 0 : index
    %166 = vector.load %arg16[%c0_120, %c0_121] : memref<128x32xf32, #tpu.memory_space<vmem>>, vector<128x32xf32>
    %cst_122 = arith.constant dense<0.000000e+00> : vector<2x32xf32>
    %167 = tpu.matmul %165, %166, %cst_122 {dimension_numbers = #tpu.dot_dimension_numbers<[1], [0], [0], [1], [0, 0, 1, 1], [], []>} : vector<2x128xf32>, vector<128x32xf32>, vector<2x32xf32> -> vector<2x32xf32>
    %c0_123 = arith.constant 0 : index
    %c0_124 = arith.constant 0 : index
    %168 = vector.load %arg17[%c0_123, %c0_124] : memref<2x32xf32, #tpu.memory_space<vmem>>, vector<2x32xf32>
    tpu.vector_store %arg17[%c0_123, %c0_124], %167 {strides = array<i32>} : memref<2x32xf32, #tpu.memory_space<vmem>>, vector<2x32xf32>,
    return
  }
}

</mosaic_0001>

<bundles_post_ra>
// kernel: forward.1
= control target key start
LH: loop header
LB: loop body
LE: loop exit
PB: predicated region body
PF: predicated region fallthrough
CT: control target
= control target key end

     0   :  { %s2012_s0 = inlined_call_operand.vmem [shape: f32[36,64], index: 0, kind: input, shape index: {}]   ;;  %s2013_s1 = inlined_call_operand.hbm [shape: f32[256,64], index: 1, kind: input, shape index: {}]   ;;  %s2014_s2 = inlined_call_operand.hbm [shape: f32[4,32], index: 2, kind: input, shape index: {}]   ;;  %s2015_s3 = inlined_call_operand.hbm [shape: f32[64,8], index: 3, kind: input, shape index: {}]   ;;  %s2016_s4 = inlined_call_operand.hbm [shape: f32[32,4], index: 4, kind: input, shape index: {}]   ;;  %s2017_s5 = inlined_call_operand.hbm [shape: f32[8,64], index: 5, kind: input, shape index: {}]   ;;  %s2018_s6 = inlined_call_operand.vmem [shape: f32[256,64], index: 6, kind: input, shape index: {}]   ;;  %s2019_s7 = inlined_call_operand.hbm [shape: f32[4,16], index: 7, kind: input, shape index: {}]   ;;  %s2020_s8 = inlined_call_operand.hbm [shape: f32[64,16], index: 8, kind: input, shape index: {}]   ;;  %s2021_s9 = inlined_call_operand.hbm [shape: f32[16,4], index: 9, kind: input, shape index: {}]   ;;  %s2022_s10 = inlined_call_operand.vmem [shape: f32[16,64], index: 10, kind: input, shape index: {}]   ;;  %s2023_s11 = inlined_call_operand.vmem [shape: f32[256,64], index: 11, kind: input, shape index: {}]   ;;  %s2024_s12 = inlined_call_operand.hbm [shape: f32[4,8], index: 12, kind: input, shape index: {}]   ;;  %s2025_s13 = inlined_call_operand.vmem [shape: f32[64,32], index: 13, kind: input, shape index: {}]   ;;  %s2026_s14 = inlined_call_operand.hbm [shape: f32[8,4], index: 14, kind: input, shape index: {}]   ;;  %s2027_s15 = inlined_call_operand.hbm [shape: f32[32,64], index: 15, kind: input, shape index: {}]   ;;  %s2028_s16 = inlined_call_operand.hbm [shape: f32[128,32], index: 16, kind: input, shape index: {}]   ;;  %s2029_s17 = inlined_call_operand.hbm [shape: f32[2,32], index: 17, kind: output, shape index: {}]  }
   0x1   :  { %2031 = sst [smem:[#allocation34_spill]] %s2012_s0 }
   0x2   :  { %2032 = sst [smem:[#allocation35_spill]] %s2013_s1 }
   0x3   :  { %22 = vsyncpa [#allocation6], 0 }
   0x4   :  { %23 = vsyncpa [#allocation9], 0 }
   0x5   :  { %24 = vsyncpa [#allocation12], 0 }
   0x6   :  { %25 = vsyncpa [#allocation15], 0 }
   0x7   :  { %26 = vsyncpa [#allocation18], 0 }
   0x8   :  { %27 = vsyncpa [#allocation21], 0 }
   0x9   :  { %28 = vsyncpa [#allocation24], 0  ;;  %s50_s26 = sshll.u32 %s2014_s2, 4  ;;  %s51_s26 = int_to_ptr.hbm [resolvable:$true] %s50_s26 }
   0xa   :  { %29 = vsyncpa [#allocation7], 0  ;;  %s1526_s27 = smov [#allocation8]   ;;  %s73_s30 = sshll.u32 %s2016_s4, 4  ;;  %s74_s30 = int_to_ptr.hbm [resolvable:$true] %s73_s30 }
   0xb   :  { %s52_s28 = sshll.u32 %s1526_s27, 4  ;;  %s1527_s18 = smov [#allocation11]   ;;  %s53_s28 = int_to_ptr.vmem [resolvable:$true] %s52_s28 }
   0xc   :  { %55 = dma.hbm_to_vmem [thread:$0]  %s51_s26, 64, %s53_s28, [#allocation9]  }
   0xd   :  { %s75_s19 = sshll.u32 %s1527_s18, 4  ;;  %s100_s21 = sshll.u32 %s2019_s7, 4  ;;  %s76_s19 = int_to_ptr.vmem [resolvable:$true] %s75_s19  ;;  %s101_s21 = int_to_ptr.hbm [resolvable:$true] %s100_s21 }
   0xe   :  { %s1528_s2 = smov 128   ;;  %s1529_s22 = smov 8  }
   0xf   :  { %81 = dma.hbm_to_vmem [thread:$0]  %s74_s30, 512, %s76_s19, [#allocation12], %s1528_s2, %s1528_s2, %s1529_s22  }
  0x10   :  { %s123_s25 = sshll.u32 %s2021_s9, 4  ;;  %s1530_s4 = smov [#allocation14]   ;;  %s124_s25 = int_to_ptr.hbm [resolvable:$true] %s123_s25 }
  0x11   :  { %s102_s26 = sshll.u32 %s1530_s4, 4  ;;  %s1531_s27 = smov [#allocation17]   ;;  %s103_s26 = int_to_ptr.vmem [resolvable:$true] %s102_s26 }
  0x12   :  { %105 = dma.hbm_to_vmem [thread:$0]  %s101_s21, 64, %s103_s26, [#allocation15]  }
  0x13   :  { %s125_s28 = sshll.u32 %s1531_s27, 4  ;;  %s154_s0 = sshll.u32 %s2026_s14, 4  ;;  %s126_s28 = int_to_ptr.vmem [resolvable:$true] %s125_s28  ;;  %s155_s0 = int_to_ptr.hbm [resolvable:$true] %s154_s0 }
  0x14   :  { %131 = dma.hbm_to_vmem [thread:$0]  %s124_s25, 256, %s126_s28, [#allocation18], %s1528_s2, %s1528_s2, %s1529_s22  }
  0x15   :  { %s2033_s9 = sld [smem:[#allocation35_spill]]  ;;  %s1532_s1 = smov [#allocation20]  }
  0x16   :  { %s156_s20 = sshll.u32 %s1532_s1, 4  ;;  %s1533_s21 = smov [#allocation5]   ;;  %s157_s20 = int_to_ptr.vmem [resolvable:$true] %s156_s20 }
  0x17   :  { %159 = dma.hbm_to_vmem [thread:$0]  %s155_s0, 128, %s157_s20, [#allocation21]  }
  0x18   :  { %s38_s23 = sshll.u32 %s1533_s21, 4  ;;  %s60_s14 = sshll.u32 %s2015_s3, 4  ;;  %s39_s23 = int_to_ptr.vmem [resolvable:$true] %s38_s23  ;;  %s61_s14 = int_to_ptr.hbm [resolvable:$true] %s60_s14 }
  0x19   :  { %s87_s27 = sshll.u32 %s2017_s5, 4  ;;  %s1534_s28 = smov [#allocation10]   ;;  %s88_s27 = int_to_ptr.hbm [resolvable:$true] %s87_s27 }
  0x1a   :  { %s62_s7 = sshll.u32 %s1534_s28, 4  ;;  %s1535_s29 = smov [#allocation13]   ;;  %s63_s7 = int_to_ptr.vmem [resolvable:$true] %s62_s7 }
  0x1b   :  { %s36_s19 = sshll.u32 %s2033_s9, 4  ;;  %s89_s3 = sshll.u32 %s1535_s29, 4  ;;  %s37_s19 = int_to_ptr.hbm [resolvable:$true] %s36_s19  ;;  %s90_s3 = int_to_ptr.vmem [resolvable:$true] %s89_s3 }
  0x1c   :  { %44 = dma.hbm_to_vmem [thread:$0]  %s37_s19, 4096, %s39_s23, [#allocation6], %s1528_s2, %s1528_s2, %s1529_s22  }
  0x1d   :  { %68 = dma.hbm_to_vmem [thread:$0]  %s61_s14, 1024, %s63_s7, [#allocation9], %s1528_s2, %s1528_s2, %s1529_s22  }
  0x1e   :  { %s110_s18 = sshll.u32 %s2020_s8, 4  ;;  %s141_s5 = sshll.u32 %s2024_s12, 4  ;;  %s111_s18 = int_to_ptr.hbm [resolvable:$true] %s110_s18  ;;  %s142_s5 = int_to_ptr.hbm [resolvable:$true] %s141_s5 }
  0x1f   :  { %92 = dma.hbm_to_vmem [thread:$0]  %s88_s27, 128, %s90_s3, [#allocation12]  }
  0x20   :  { %s1536_s1 = smov [#allocation16]   ;;  %s1537_s21 = smov [#allocation19]  }
  0x21   :  { %s112_s20 = sshll.u32 %s1536_s1, 4  ;;  %s143_s23 = sshll.u32 %s1537_s21, 4  ;;  %s113_s20 = int_to_ptr.vmem [resolvable:$true] %s112_s20  ;;  %s144_s23 = int_to_ptr.vmem [resolvable:$true] %s143_s23 }
  0x22   :  { %118 = dma.hbm_to_vmem [thread:$0]  %s111_s18, 1024, %s113_s20, [#allocation15], %s1528_s2, %s1528_s2, %s1529_s22  }
  0x23   :  { %s164_s8 = sshll.u32 %s2027_s15, 4  ;;  %s177_s12 = sshll.u32 %s2028_s16, 4  ;;  %s165_s8 = int_to_ptr.hbm [resolvable:$true] %s164_s8  ;;  %s178_s12 = int_to_ptr.hbm [resolvable:$true] %s177_s12 }
  0x24   :  { %146 = dma.hbm_to_vmem [thread:$0]  %s142_s5, 64, %s144_s23, [#allocation18]  }
  0x25   :  { %s1538_s26 = smov [#allocation22]   ;;  %s1539_s28 = smov [#allocation23]  }
  0x26   :  { %s166_s27 = sshll.u32 %s1538_s26, 4  ;;  %s179_s7 = sshll.u32 %s1539_s28, 4  ;;  %s167_s27 = int_to_ptr.vmem [resolvable:$true] %s166_s27  ;;  %s180_s7 = int_to_ptr.vmem [resolvable:$true] %s179_s7 }
  0x27   :  { %172 = dma.hbm_to_vmem [thread:$0]  %s165_s8, 512, %s167_s27, [#allocation21], %s1528_s2, %s1528_s2, %s1529_s22  }
  0x28   :  { %185 = dma.hbm_to_vmem [thread:$0]  %s178_s12, 2048, %s180_s7, [#allocation24], %s1528_s2, %s1528_s2, %s1529_s22  }
  0x29   :  { %1510 = dma.done.wait [#allocation6], 4096  }
  0x2a   :  { %1511 = vsyncadd [#allocation6], 4294963200 }
  0x2b   :  { %1512 = dma.done.wait [#allocation9], 1088  }
  0x2c   :  { %1513 = vsyncadd [#allocation9], 4294966208 }
  0x2d   :  { %1514 = dma.done.wait [#allocation12], 640  }
  0x2e   :  { %1515 = vsyncadd [#allocation12], 4294966656 }
  0x2f   :  { %1516 = dma.done.wait [#allocation15], 1088  }
  0x30   :  { %1517 = vsyncadd [#allocation15], 4294966208 }
  0x31   :  { %1518 = dma.done.wait [#allocation18], 320  }
  0x32   :  { %1519 = vsyncadd [#allocation18], 4294966976 }
  0x33   :  { %1520 = dma.done.wait [#allocation21], 640  }
  0x34   :  { %1521 = vsyncadd [#allocation21], 4294966656 }
  0x35   :  { %1522 = dma.done.wait [#allocation24], 2048  }
  0x36   :  { %1523 = vsyncadd [#allocation24], 4294965248  ;;  %s2034_s29 = sld [smem:[#allocation34_spill]]  ;;  %v292_v3 = vld [vmem:[#allocation5 + $0x78] sm:$0xff]  ;;  %v291_v5 = vld [vmem:[#allocation5 + $0x70] sm:$0xff]  ;;  %s1540_s22 = smov 64  }
  0x37   :  { %v308_v4 = vld [vmem:[#allocation5 + $0xf8] sm:$0xff]  ;;  %309 = vmatpush.msra.mxu0 %v292_v3  ;;  %v307_v6 = vld [vmem:[#allocation5 + $0xf0] sm:$0xff]  ;;  %v290_v7 = vld [vmem:[#allocation5 + $0x68] sm:$0xff]  ;;  %vm234_vm0 = vcmask 523264   ;;  %vm371_vm1 = vcmask 261120   ;;  %vm443_vm5 = vcmask 1041408  }
  0x38   :  { %332 = vmatpush.msra.mxu1 %v308_v4  ;;  %v306_v8 = vld [vmem:[#allocation5 + $0xe8] sm:$0xff]  ;;  %v289_v11 = vld [vmem:[#allocation5 + $0x60] sm:$0xff]  ;;  %v288_v14 = vld [vmem:[#allocation5 + $0x58] sm:$0xff]  ;;  %vm445_vm6 = vcmask 64512   ;;  %vm482_vm7 = vcmask 1043456   ;;  %vm469_vm8 = vcmask 31744  }
  0x39   :  { %310 = vmatpush.msra.mxu0 %v291_v5  ;;  %v305_v12 = vld [vmem:[#allocation5 + $0xe0] sm:$0xff]  ;;  %v304_v15 = vld [vmem:[#allocation5 + $0xd8] sm:$0xff]  ;;  %v287_v16 = vld [vmem:[#allocation5 + $0x50] sm:$0xff]  ;;  %vm237_vm9 = vcmask 519168   ;;  %vm654_vm12 = vcmask 130048   ;;  %s1118_s19 = sshll.u32 %s2029_s17, 4  ;;  %s1119_s19 = int_to_ptr.hbm [resolvable:$true] %s1118_s19 }
  0x3a   :  { %333 = vmatpush.msra.mxu1 %v307_v6  ;;  %v303_v17 = vld [vmem:[#allocation5 + $0xd0] sm:$0xff]  ;;  %v286_v18 = vld [vmem:[#allocation5 + $0x48] sm:$0xff]  ;;  %v285_v20 = vld [vmem:[#allocation5 + $0x40] sm:$0xff] }
  0x3b   :  { %311 = vmatpush.msra.mxu0 %v290_v7  ;;  %v302_v19 = vld [vmem:[#allocation5 + $0xc8] sm:$0xff]  ;;  %v301_v21 = vld [vmem:[#allocation5 + $0xc0] sm:$0xff]  ;;  %v284_v22 = vld [vmem:[#allocation5 + $0x38] sm:$0xff] }
  0x3c   :  { %v1135_v0 = vld [vmem:[%s2034_s29 + $0x1] ss:$2 sm:$0xff]  ;;  %334 = vmatpush.msra.mxu1 %v306_v8  ;;  %v282_v26 = vld [vmem:[#allocation5 + $0x28] sm:$0xff]  ;;  %v242_v39 = vld [vmem:[%s2034_s29] ss:$2 sm:$0xff] }
  0x3d   :  { %v1139_v1 = vld [vmem:[%s2034_s29 + $0x3] ss:$2 sm:$0xff]  ;;  %v1136_v9 = vld [vmem:[%s2034_s29 + $0x13] ss:$2 sm:$0xff]  ;;  %312 = vmatpush.msra.mxu0 %v289_v11  ;;  %v1137_v40 = vld [vmem:[%s2034_s29 + $0x2] ss:$2 sm:$0xff] }
  0x3e   :  { %v1177_v2 = vpack.i.bf16 %v1139_v1, %v1135_v0  ;;  %v1140_v10 = vld [vmem:[%s2034_s29 + $0x15] ss:$2 sm:$0xff]  ;;  %335 = vmatpush.msra.mxu1 %v305_v12  ;;  %v300_v23 = vld [vmem:[#allocation5 + $0xb8] sm:$0xff]  ;;  %v281_v28 = vld [vmem:[#allocation5 + $0x20] sm:$0xff] }
  0x3f   :  { %v1182_v13 = vpack.i.bf16 %v1140_v10, %v1136_v9  ;;  %313 = vmatpush.msra.mxu0 %v288_v14  ;;  %v283_v24 = vld [vmem:[#allocation5 + $0x30] sm:$0xff]  ;;  %v298_v27 = vld [vmem:[#allocation5 + $0xa8] sm:$0xff]  ;;  %v297_v29 = vld [vmem:[#allocation5 + $0xa0] sm:$0xff] }
  0x40   :  { %1178 = vrot.lane.b32.xlu0 %v1177_v2, %s1540_s22  ;;  %336 = vmatpush.msra.mxu1 %v304_v15  ;;  %v299_v25 = vld [vmem:[#allocation5 + $0xb0] sm:$0xff]  ;;  %v280_v30 = vld [vmem:[#allocation5 + $0x18] sm:$0xff]  ;;  %v278_v34 = vld [vmem:[#allocation5 + $0x8] sm:$0xff] }
  0x41   :  { %314 = vmatpush.msra.mxu0 %v287_v16  ;;  %v296_v31 = vld [vmem:[#allocation5 + $0x98] sm:$0xff]  ;;  %v279_v32 = vld [vmem:[#allocation5 + $0x10] sm:$0xff]  ;;  %v294_v35 = vld [vmem:[#allocation5 + $0x88] sm:$0xff] }
  0x42   :  { %337 = vmatpush.msra.mxu1 %v303_v17  ;;  %v295_v33 = vld [vmem:[#allocation5 + $0x90] sm:$0xff]  ;;  %v277_v36 = vld [vmem:[#allocation5] sm:$0xff] }
  0x43   :  { %315 = vmatpush.msra.mxu0 %v286_v18  ;;  %v293_v37 = vld [vmem:[#allocation5 + $0x80] sm:$0xff]  ;;  %v1138_v47 = vld [vmem:[%s2034_s29 + $0x14] ss:$2 sm:$0xff] }
  0x44   :  { %338 = vmatpush.msra.mxu1 %v302_v19  ;;  %v1134_v46 = vld [vmem:[%s2034_s29 + $0x12] ss:$2 sm:$0xff]  ;;  %v355_v60 = vld [vmem:[#allocation8] sm:$0xf] }
  0x45   :  { %316 = vmatpush.msra.mxu0 %v285_v20  ;;  %v363_v61 = vld [vmem:[#allocation10 + $0x38] sm:$0xff]  ;;  %v362_v62 = vld [vmem:[#allocation10 + $0x30] sm:$0xff]  ;;  %v361_v63 = vld [vmem:[#allocation10 + $0x28] sm:$0xff] }
  0x46   :  { %339 = vmatpush.msra.mxu1 %v301_v21  ;;  %v360_v0 = vld [vmem:[#allocation10 + $0x20] sm:$0xff]  ;;  %v359_v1 = vld [vmem:[#allocation10 + $0x18] sm:$0xff]  ;;  %v358_v2 = vld [vmem:[#allocation10 + $0x10] sm:$0xff] }
  0x47   :  { %317 = vmatpush.msra.mxu0 %v284_v22  ;;  %v357_v3 = vld [vmem:[#allocation10 + $0x8] sm:$0xff]  ;;  %v356_v4 = vld [vmem:[#allocation10] sm:$0xff] }
  0x48   :  { %1183 = vrot.lane.b32.xlu0 %v1182_v13, %s1540_s22  ;;  %340 = vmatpush.msra.mxu1 %v300_v23  ;;  %v368_v8 = vld [vmem:[#allocation13] sm:$0xff] }
  0x49   :  { %318 = vmatpush.msra.mxu0 %v283_v24  ;;  %464 = vmatpush.msra.mxu2 %v368_v8 }
  0x4a   :  { %341 = vmatpush.msra.mxu1 %v299_v25  ;;  %v364_v25 = vld [vmem:[#allocation11] sm:$0xff] }
  0x4b   :  { %319 = vmatpush.msra.mxu0 %v282_v26 }
  0x4c   :  { %342 = vmatpush.msra.mxu1 %v298_v27  ;;  %v365_v27 = vld [vmem:[#allocation11 + $0x8] sm:$0xff] }
  0x4d   :  { %320 = vmatpush.msra.mxu0 %v281_v28  ;;  %v366_v28 = vld [vmem:[#allocation11 + $0x10] sm:$0xff] }
  0x4e   :  { %343 = vmatpush.msra.mxu1 %v297_v29  ;;  %v367_v29 = vld [vmem:[#allocation11 + $0x18] sm:$0xff] }
  0x4f   :  { %321 = vmatpush.msra.mxu0 %v280_v30  ;;  %v1541_v30 = vmov 0.0  }
  0x50   :  { %344 = vmatpush.msra.mxu1 %v296_v31  ;;  %235 = vst.msk [vmem:[#allocation2] sm:$0xff] %vm234_vm0, %v1541_v30 }
  0x51   :  { %322 = vmatpush.msra.mxu0 %v279_v32  ;;  %236 = vst.msk [vmem:[#allocation2 + $0x8] sm:$0xff] %vm234_vm0, %v1541_v30 }
  0x52   :  { %345 = vmatpush.msra.mxu1 %v295_v33  ;;  %239 = vst.msk [vmem:[#allocation3] sm:$0xff] %vm234_vm0, %v1541_v30  ;;  %v583_v33 = vld [vmem:[%s2018_s6 + $0x78] sm:$0xff] }
  0x53   :  { %323 = vmatpush.msra.mxu0 %v278_v34  ;;  %238 = vst.msk [vmem:[#allocation2 + $0x10] sm:$0xf] %vm237_vm9, %v1541_v30  ;;  %v599_v34 = vld [vmem:[%s2018_s6 + $0xf8] sm:$0xff] }
  0x54   :  { %346 = vmatpush.msra.mxu1 %v294_v35  ;;  %240 = vst.msk [vmem:[#allocation3 + $0x8] sm:$0xf] %vm237_vm9, %v1541_v30  ;;  %v582_v35 = vld [vmem:[%s2018_s6 + $0x70] sm:$0xff] }
  0x55   :  { %324 = vmatpush.msra.mxu0 %v277_v36  ;;  %241 = vst.msk [vmem:[#allocation4] sm:$0xf] %vm237_vm9, %v1541_v30  ;;  %v598_v36 = vld [vmem:[%s2018_s6 + $0xf0] sm:$0xff] }
  0x56   :  { %347 = vmatpush.msra.mxu1 %v293_v37  ;;  %v581_v37 = vld [vmem:[%s2018_s6 + $0x68] sm:$0xff] }
  0xb2   :  { %v1179_v38 = vpop.permute.xlu0 %1178 }
  0xb3   :  { %v1181_v41 = vunpack.i.h.bf16 %v1179_v38  ;;  %v1180_v42 = vunpack.i.l.bf16 %v1179_v38  ;;  %v597_v38 = vld [vmem:[%s2018_s6 + $0xe8] sm:$0xff] }
  0xb5   :  { %v273_v43 = vsel %vm234_vm0, %v242_v39, %v1180_v42  ;;  %v275_v44 = vsel %vm234_vm0, %v1137_v40, %v1181_v41  ;;  %v580_v40 = vld [vmem:[%s2018_s6 + $0x60] sm:$0xff] }
  0xb6   :  { %325 = vmatmul.f32.vlgmr.msra.gmra.mxu0 %v273_v43  ;;  %348 = vmatmul.f32.vlgmr.msra.gmra.mxu1 %v275_v44  ;;  %v596_v41 = vld [vmem:[%s2018_s6 + $0xe0] sm:$0xff]  ;;  %v579_v44 = vld [vmem:[%s2018_s6 + $0x58] sm:$0xff] }
  0xba   :  { %v1184_v45 = vpop.permute.xlu0 %1183 }
  0xbb   :  { %v1186_v48 = vunpack.i.h.bf16 %v1184_v45  ;;  %v1185_v49 = vunpack.i.l.bf16 %v1184_v45  ;;  %v595_v45 = vld [vmem:[%s2018_s6 + $0xd8] sm:$0xff] }
  0xbd   :  { %v274_v50 = vsel %vm234_vm0, %v1134_v46, %v1185_v49  ;;  %v276_v51 = vsel %vm234_vm0, %v1138_v47, %v1186_v48  ;;  %v578_v47 = vld [vmem:[%s2018_s6 + $0x50] sm:$0xff] }
  0xbe   :  { %328 = vmatmul.f32.gmra.mxu0 %v274_v50  ;;  %351 = vmatmul.f32.gmra.mxu1 %v276_v51  ;;  %v594_v48 = vld [vmem:[%s2018_s6 + $0xd0] sm:$0xff]  ;;  %v577_v50 = vld [vmem:[%s2018_s6 + $0x48] sm:$0xff] }
  0xbf   :  { %v593_v51 = vld [vmem:[%s2018_s6 + $0xc8] sm:$0xff] }
 0x133   :  { %v326_v52 = vpop.f32.mrf.mxu0  ;;  %v349_v53 = vpop.f32.mrf.mxu1 }
 0x134   :  { %v1720_v56 = vadd.f32 %v349_v53, %v326_v52  ;;  %v576_v53 = vld [vmem:[%s2018_s6 + $0x40] sm:$0xff] }
 0x136   :  { %v369_v59 = vmul.f32 %v1720_v56, %v1720_v56 }
 0x13b   :  { %v329_v54 = vpop.f32.mrf.mxu0  ;;  %v352_v55 = vpop.f32.mrf.mxu1 }
 0x13c   :  { %v1722_v57 = vadd.f32 %v352_v55, %v329_v54  ;;  %v592_v54 = vld [vmem:[%s2018_s6 + $0xc0] sm:$0xff] }
 0x13e   :  { %v370_v58 = vmul.f32 %v1722_v57, %v1722_v57 }
 0x140   :  { %387 = vmatpush.msra.mxu3 %v370_v58  ;;  %v575_v58 = vld [vmem:[%s2018_s6 + $0x38] sm:$0xff] }
 0x142   :  { %388 = vmatpush.msra.mxu3 %v369_v59 }
 0x144   :  { %389 = vmatpush.msra.mxu3 %v1722_v57 }
 0x146   :  { %390 = vmatpush.msra.mxu3 %v1720_v56 }
 0x147   :  { %1141 = vmatmul.msk.f32.vlgmr.msra.gmra.mxu3 %vm371_vm1, %v355_v60  ;;  %v574_v60 = vld [vmem:[%s2018_s6 + $0x30] sm:$0xff] }
 0x148   :  { %406 = vmatpush.msrb.mxu3 %v363_v61  ;;  %v590_v61 = vld [vmem:[%s2018_s6 + $0xb0] sm:$0xff] }
 0x14a   :  { %407 = vmatpush.msrb.mxu3 %v362_v62 }
 0x14c   :  { %408 = vmatpush.msrb.mxu3 %v361_v63  ;;  %v573_v63 = vld [vmem:[%s2018_s6 + $0x28] sm:$0xff] }
 0x14e   :  { %409 = vmatpush.msrb.mxu3 %v360_v0  ;;  %v589_v0 = vld [vmem:[%s2018_s6 + $0xa8] sm:$0xff] }
 0x150   :  { %410 = vmatpush.msrb.mxu3 %v359_v1  ;;  %v572_v1 = vld [vmem:[%s2018_s6 + $0x20] sm:$0xff] }
 0x152   :  { %411 = vmatpush.msrb.mxu3 %v358_v2  ;;  %v588_v2 = vld [vmem:[%s2018_s6 + $0xa0] sm:$0xff] }
 0x154   :  { %412 = vmatpush.msrb.mxu3 %v357_v3  ;;  %v571_v3 = vld [vmem:[%s2018_s6 + $0x18] sm:$0xff] }
 0x156   :  { %413 = vmatpush.msrb.mxu3 %v356_v4  ;;  %v587_v4 = vld [vmem:[%s2018_s6 + $0x98] sm:$0xff] }
 0x158   :  { %600 = vmatpush.msra.mxu3 %v583_v33  ;;  %v648_v33 = vld [vmem:[#allocation16 + $0x38] sm:$0xff] }
 0x159   :  { %689 = vmatpush.msrb.mxu1 %v648_v33 }
 0x15a   :  { %601 = vmatpush.msra.mxu3 %v582_v35  ;;  %v646_v35 = vld [vmem:[#allocation16 + $0x28] sm:$0xff] }
 0x15c   :  { %602 = vmatpush.msra.mxu3 %v581_v37  ;;  %v644_v37 = vld [vmem:[#allocation16 + $0x18] sm:$0xff] }
 0x15e   :  { %603 = vmatpush.msra.mxu3 %v580_v40 }
 0x160   :  { %604 = vmatpush.msra.mxu3 %v579_v44  ;;  %v640_v44 = vld [vmem:[#allocation14] sm:$0xf] }
 0x162   :  { %605 = vmatpush.msra.mxu3 %v578_v47 }
 0x164   :  { %606 = vmatpush.msra.mxu3 %v577_v50  ;;  %v651_v50 = vld [vmem:[%s2022_s10] sm:$0xff] }
 0x166   :  { %607 = vmatpush.msra.mxu3 %v576_v53 }
 0x168   :  { %608 = vmatpush.msra.mxu3 %v575_v58 }
 0x16a   :  { %609 = vmatpush.msra.mxu3 %v574_v60 }
 0x16c   :  { %610 = vmatpush.msra.mxu3 %v573_v63 }
 0x16e   :  { %611 = vmatpush.msra.mxu3 %v572_v1 }
 0x170   :  { %612 = vmatpush.msra.mxu3 %v571_v3  ;;  %v649_v3 = vld [vmem:[#allocation17] sm:$0xff] }
 0x1ca   :  { %v392_v5 = vpop.f32.mrf.mxu3 }
 0x1cb   :  { %1142 = vmatmul.msk.f32.vlgmr.msrb.gmra.mxu3 %vm234_vm0, %v392_v5  ;;  %v570_v5 = vld [vmem:[%s2018_s6 + $0x10] sm:$0xff] }
 0x1cc   :  { %613 = vmatpush.msra.mxu3 %v570_v5  ;;  %v650_v5 = vld [vmem:[#allocation17 + $0x8] sm:$0xff] }
 0x24e   :  { %v415_v6 = vpop.f32.mrf.mxu3 }
 0x24f   :  { %v418_v7 = vmul.f32 %v415_v6, %v415_v6  ;;  %v435_v20 = vsub.f32 0.0, %v415_v6 }
 0x251   :  { %v420_v9 = vrot.slane %v418_v7, 6 }
 0x253   :  { %v422_v10 = vsub.f32 %v415_v6, %v420_v9  ;;  %v586_v6 = vld [vmem:[%s2018_s6 + $0x90] sm:$0xff] }
 0x255   :  { %v423_v11 = vmax.f32 %v422_v10, 0.0 }
 0x257   :  { %v424_v12 = vadd.f32 1e-05, %v423_v11 }
 0x259   :  { %1192 = vrsqrt.f32 %v424_v12  ;;  %vm431_vm3 = vweird.f32 %v424_v12 }
 0x25f   :  { %v1193_v13 = vpop.eup %1192 }
 0x260   :  { %v426_v14 = vmul.f32 %v1193_v13, %v424_v12  ;;  %vm432_vm2 = vweird.f32 %v1193_v13 }
 0x261   :  { %vm433_vm4 = vmor %vm431_vm3, %vm432_vm2  ;;  %vm788_vm3 = vcmask 523268  }
 0x262   :  { %v427_v15 = vmul.f32 %v1193_v13, %v426_v14 }
 0x264   :  { %v428_v16 = vmul.f32 0.5, %v427_v15 }
 0x266   :  { %v429_v17 = vsub.f32 1.5, %v428_v16  ;;  %v569_v16 = vld [vmem:[%s2018_s6 + $0x8] sm:$0xff] }
 0x267   :  { %614 = vmatpush.msra.mxu3 %v569_v16  ;;  %v856_v16 = vld [vmem:[%s2023_s11 + $0xc8] sm:$0xff] }
 0x268   :  { %v430_v18 = vmul.f32 %v1193_v13, %v429_v17  ;;  %v585_v17 = vld [vmem:[%s2018_s6 + $0x88] sm:$0xff] }
 0x26a   :  { %v434_v19 = vsel %vm433_vm4, %v1193_v13, %v430_v18  ;;  %v568_v18 = vld [vmem:[%s2018_s6] sm:$0xff] }
 0x26b   :  { %v437_v21 = vrot.slane %v434_v19, 2  ;;  %v584_v19 = vld [vmem:[%s2018_s6 + $0x80] sm:$0xff]  ;;  %615 = vmatpush.msra.mxu3 %v568_v18 }
 0x26d   :  { %v439_v22 = vmul.f32 %v437_v21, %v435_v20 }
 0x26f   :  { %v441_v23 = vrot.slane %v439_v22, 6 }
 0x271   :  { %v444_v24 = vsel %vm443_vm5, %v437_v21, %v441_v23 }
 0x272   :  { %1143 = vmatmul.msk.f32.vlgmr.msra.gmra.mxu2 %vm445_vm6, %v444_v24 }
 0x2f5   :  { %v466_v26 = vpop.f32.mrf.mxu2 }
 0x2f6   :  { %1144 = vmatpush.msk.msrb.mxu2 %vm482_vm7, %v466_v26 }
 0x2f7   :  { %1145 = vmatmul.msk.f32.vlgmr.msrb.gmra.mxu2 %vm469_vm8, %v364_v25 }
 0x2f8   :  { %620 = vmatpush.msra.mxu2 %v599_v34  ;;  %v647_v34 = vld [vmem:[#allocation16 + $0x30] sm:$0xff] }
 0x2f9   :  { %690 = vmatpush.msrb.mxu1 %v647_v34 }
 0x2fa   :  { %621 = vmatpush.msra.mxu2 %v598_v36  ;;  %v645_v36 = vld [vmem:[#allocation16 + $0x20] sm:$0xff] }
 0x2fb   :  { %691 = vmatpush.msrb.mxu1 %v646_v35 }
 0x2fc   :  { %622 = vmatpush.msra.mxu2 %v597_v38  ;;  %v643_v38 = vld [vmem:[#allocation16 + $0x10] sm:$0xff] }
 0x2fd   :  { %692 = vmatpush.msrb.mxu1 %v645_v36 }
 0x2fe   :  { %623 = vmatpush.msra.mxu2 %v596_v41 }
 0x2ff   :  { %1146 = vmatmul.msk.f32.gmra.mxu2 %vm469_vm8, %v365_v27  ;;  %693 = vmatpush.msrb.mxu1 %v644_v37 }
 0x300   :  { %624 = vmatpush.msra.mxu2 %v595_v45  ;;  %v641_v45 = vld [vmem:[#allocation16] sm:$0xff] }
 0x301   :  { %694 = vmatpush.msrb.mxu1 %v643_v38  ;;  %v843_v38 = vld [vmem:[%s2023_s11 + $0x60] sm:$0xff] }
 0x302   :  { %625 = vmatpush.msra.mxu2 %v594_v48 }
 0x304   :  { %626 = vmatpush.msra.mxu2 %v593_v51 }
 0x306   :  { %627 = vmatpush.msra.mxu2 %v592_v54 }
 0x307   :  { %1147 = vmatmul.msk.f32.gmra.mxu2 %vm469_vm8, %v366_v28 }
 0x30f   :  { %1148 = vmatmul.msk.f32.gmra.mxu2 %vm469_vm8, %v367_v29 }
 0x37a   :  { %v503_v31 = vpop.f32.mrf.mxu2 }
 0x37b   :  { %v515_v39 = vmul.f32 %v503_v31, %v1720_v56 }
 0x382   :  { %v506_v32 = vpop.f32.mrf.mxu2 }
 0x383   :  { %v516_v52 = vmul.f32 %v506_v32, %v1722_v57  ;;  %v591_v57 = vld [vmem:[%s2018_s6 + $0xb8] sm:$0xff] }
 0x384   :  { %628 = vmatpush.msra.mxu2 %v591_v57 }
 0x386   :  { %629 = vmatpush.msra.mxu2 %v590_v61 }
 0x388   :  { %630 = vmatpush.msra.mxu2 %v589_v0 }
 0x38a   :  { %v509_v42 = vpop.f32.mrf.mxu2  ;;  %631 = vmatpush.msra.mxu2 %v588_v2 }
 0x38b   :  { %v517_v43 = vadd.f32 %v515_v39, %v509_v42  ;;  %v642_v39 = vld [vmem:[#allocation16 + $0x8] sm:$0xff] }
 0x38c   :  { %632 = vmatpush.msra.mxu2 %v587_v4  ;;  %695 = vmatpush.msrb.mxu1 %v642_v39  ;;  %v847_v39 = vld [vmem:[%s2023_s11 + $0x80] sm:$0xff] }
 0x38d   :  { %vm519_vm10 = vcmp.gt.f32.partialorder %v517_v43, 0.0  ;;  %v521_v46 = vmul.f32 0.01, %v517_v43 }
 0x38e   :  { %633 = vmatpush.msra.mxu2 %v586_v6  ;;  %696 = vmatpush.msrb.mxu1 %v641_v45  ;;  %v862_v6 = vld [vmem:[%s2023_s11 + $0xf8] sm:$0xff]  ;;  %v837_v45 = vld [vmem:[%s2023_s11 + $0x30] sm:$0xff] }
 0x38f   :  { %v523_v49 = vsel %vm519_vm10, %v517_v43, %v521_v46  ;;  %vm1109_vm10 = vcmask 254976  }
 0x390   :  { %525 = vst.msk [vmem:[#allocation2 + $0x1] sm:$0xff] %vm234_vm0, %v523_v49  ;;  %634 = vmatpush.msra.mxu2 %v585_v17  ;;  %v652_v49 = vld [vmem:[%s2022_s10 + $0x8] sm:$0xff]  ;;  %v855_v17 = vld [vmem:[%s2023_s11 + $0xc0] sm:$0xff] }
 0x392   :  { %v512_v55 = vpop.f32.mrf.mxu2  ;;  %635 = vmatpush.msra.mxu2 %v584_v19 }
 0x393   :  { %v518_v56 = vadd.f32 %v516_v52, %v512_v55 }
 0x395   :  { %vm520_vm11 = vcmp.gt.f32.partialorder %v518_v56, 0.0  ;;  %v522_v59 = vmul.f32 0.01, %v518_v56 }
 0x397   :  { %v524_v62 = vsel %vm520_vm11, %v518_v56, %v522_v59  ;;  %v535_v11 = vld [vmem:[#allocation2 + $0x1] ss:$2 sm:$0xf]  ;;  %v527_v27 = vld [vmem:[#allocation2] ss:$2 sm:$0xf] }
 0x398   :  { %526 = vst.msk [vmem:[#allocation2 + $0xb] sm:$0xff] %vm234_vm0, %v524_v62  ;;  %v551_v12 = vld [vmem:[#allocation2 + $0x3] ss:$2 sm:$0xf] }
 0x399   :  { %v543_v28 = vld [vmem:[#allocation2 + $0x2] ss:$2 sm:$0xf] }
 0x39f   :  { %v537_v7 = vld [vmem:[#allocation2 + $0xb] ss:$2 sm:$0xf]  ;;  %v529_v20 = vld [vmem:[#allocation2 + $0xa] ss:$2 sm:$0xf] }
 0x3a0   :  { %v553_v8 = vld [vmem:[#allocation2 + $0xd] ss:$2 sm:$0xf]  ;;  %v539_v9 = vrot.slane %v537_v7, 4  ;;  %v531_v22 = vrot.slane %v529_v20, 4  ;;  %v854_v20 = vld [vmem:[%s2023_s11 + $0xb8] sm:$0xff] }
 0x3a1   :  { %v555_v10 = vrot.slane %v553_v8, 4  ;;  %v545_v21 = vld [vmem:[#allocation2 + $0xc] ss:$2 sm:$0xf] }
 0x3a2   :  { %v541_v13 = vsel %vm482_vm7, %v535_v11, %v539_v9  ;;  %v547_v23 = vrot.slane %v545_v21, 4  ;;  %v533_v29 = vsel %vm482_vm7, %v527_v27, %v531_v22  ;;  %v861_v7 = vld [vmem:[%s2023_s11 + $0xf0] sm:$0xff]  ;;  %v860_v8 = vld [vmem:[%s2023_s11 + $0xe8] sm:$0xff]  ;;  %v859_v9 = vld [vmem:[%s2023_s11 + $0xe0] sm:$0xff] }
 0x3a3   :  { %v557_v14 = vsel %vm482_vm7, %v551_v12, %v555_v10  ;;  %v846_v10 = vld [vmem:[%s2023_s11 + $0x78] sm:$0xff]  ;;  %v845_v11 = vld [vmem:[%s2023_s11 + $0x70] sm:$0xff] }
 0x3a4   :  { %v1187_v15 = vpack.i.bf16 %v557_v14, %v541_v13  ;;  %v549_v30 = vsel %vm482_vm7, %v543_v28, %v547_v23  ;;  %863 = vmatpush.msrb.mxu3 %v846_v10  ;;  %v858_v13 = vld [vmem:[%s2023_s11 + $0xd8] sm:$0xff]  ;;  %v844_v14 = vld [vmem:[%s2023_s11 + $0x68] sm:$0xff]  ;;  %v853_v22 = vld [vmem:[%s2023_s11 + $0xb0] sm:$0xff] }
 0x3a5   :  { %v850_v27 = vld [vmem:[%s2023_s11 + $0x98] sm:$0xff]  ;;  %v849_v28 = vld [vmem:[%s2023_s11 + $0x90] sm:$0xff] }
 0x3a6   :  { %1188 = vrot.lane.b32.xlu1 %v1187_v15, %s1540_s22  ;;  %864 = vmatpush.msrb.mxu3 %v845_v11  ;;  %v857_v15 = vld [vmem:[%s2023_s11 + $0xd0] sm:$0xff] }
 0x3a8   :  { %865 = vmatpush.msrb.mxu3 %v844_v14  ;;  %v904_v14 = vld [vmem:[%s2025_s13] sm:$0xff] }
 0x3aa   :  { %866 = vmatpush.msrb.mxu3 %v843_v38  ;;  %v912_v38 = vld [vmem:[#allocation20] sm:$0xff] }
 0x418   :  { %v1189_v24 = vpop.permute.xlu1 %1188 }
 0x419   :  { %v1191_v25 = vunpack.i.h.bf16 %v1189_v24  ;;  %v1190_v26 = vunpack.i.l.bf16 %v1189_v24  ;;  %v852_v24 = vld [vmem:[%s2023_s11 + $0xa8] sm:$0xff] }
 0x41b   :  { %v566_v31 = vsel %vm234_vm0, %v533_v29, %v1190_v26  ;;  %v567_v32 = vsel %vm234_vm0, %v549_v30, %v1191_v25  ;;  %v851_v26 = vld [vmem:[%s2023_s11 + $0xa0] sm:$0xff]  ;;  %v848_v29 = vld [vmem:[%s2023_s11 + $0x88] sm:$0xff] }
 0x41c   :  { %616 = vmatmul.f32.vlgmr.msra.gmra.mxu3 %v566_v31  ;;  %636 = vmatmul.f32.vlgmr.msra.gmra.mxu2 %v567_v32 }
 0x49f   :  { %v617_v40 = vpop.f32.mrf.mxu3  ;;  %v637_v41 = vpop.f32.mrf.mxu2 }
 0x4a0   :  { %v1852_v42 = vadd.f32 %v637_v41, %v617_v40  ;;  %v842_v40 = vld [vmem:[%s2023_s11 + $0x58] sm:$0xff]  ;;  %v841_v41 = vld [vmem:[%s2023_s11 + $0x50] sm:$0xff] }
 0x4a1   :  { %867 = vmatpush.msrb.mxu3 %v842_v40  ;;  %v1088_v40 = vld [vmem:[#allocation23 + $0x78] sm:$0xff] }
 0x4a2   :  { %v653_v43 = vmul.f32 %v1852_v42, %v1852_v42 }
 0x4a3   :  { %868 = vmatpush.msrb.mxu3 %v841_v41  ;;  %v1087_v41 = vld [vmem:[#allocation23 + $0x70] sm:$0xff] }
 0x4a4   :  { %672 = vmatpush.msrb.mxu0 %v653_v43  ;;  %v839_v43 = vld [vmem:[%s2023_s11 + $0x40] sm:$0xff] }
 0x4a6   :  { %673 = vmatpush.msrb.mxu0 %v1852_v42 }
 0x4a7   :  { %1149 = vmatmul.msk.f32.vlgmr.msrb.gmra.mxu0 %vm654_vm12, %v640_v44  ;;  %v838_v44 = vld [vmem:[%s2023_s11 + $0x38] sm:$0xff] }
 0x4a8   :  { %744 = vmatpush.msra.mxu0 %v652_v49  ;;  %v833_v49 = vld [vmem:[%s2023_s11 + $0x10] sm:$0xff] }
 0x4aa   :  { %745 = vmatpush.msra.mxu0 %v651_v50  ;;  %v832_v50 = vld [vmem:[%s2023_s11 + $0x8] sm:$0xff] }
 0x4ac   :  { %883 = vmatpush.msrb.mxu0 %v862_v6  ;;  %v905_v6 = vld [vmem:[%s2025_s13 + $0x8] sm:$0xff] }
 0x4ae   :  { %884 = vmatpush.msrb.mxu0 %v861_v7 }
 0x4b0   :  { %885 = vmatpush.msrb.mxu0 %v860_v8 }
 0x4b2   :  { %886 = vmatpush.msrb.mxu0 %v859_v9 }
 0x4b4   :  { %887 = vmatpush.msrb.mxu0 %v858_v13 }
 0x4b6   :  { %888 = vmatpush.msrb.mxu0 %v857_v15 }
 0x4b8   :  { %889 = vmatpush.msrb.mxu0 %v856_v16  ;;  %v916_v16 = vld [vmem:[#allocation22 + $0x18] sm:$0xff] }
 0x4ba   :  { %890 = vmatpush.msrb.mxu0 %v855_v17 }
 0x4bc   :  { %891 = vmatpush.msrb.mxu0 %v854_v20  ;;  %v914_v20 = vld [vmem:[#allocation22 + $0x8] sm:$0xff] }
 0x4be   :  { %892 = vmatpush.msrb.mxu0 %v853_v22  ;;  %v913_v22 = vld [vmem:[#allocation22] sm:$0xff] }
 0x4c0   :  { %893 = vmatpush.msrb.mxu0 %v852_v24 }
 0x4c2   :  { %894 = vmatpush.msrb.mxu0 %v851_v26 }
 0x4c4   :  { %895 = vmatpush.msrb.mxu0 %v850_v27 }
 0x4c6   :  { %896 = vmatpush.msrb.mxu0 %v849_v28 }
 0x4c8   :  { %897 = vmatpush.msrb.mxu0 %v848_v29 }
 0x4ca   :  { %898 = vmatpush.msrb.mxu0 %v847_v39 }
 0x524   :  { %v675_v46 = vpop.f32.mrf.mxu0 }
 0x525   :  { %1150 = vmatmul.msk.f32.vlgmr.msrb.gmra.mxu1 %vm234_vm0, %v675_v46  ;;  %v836_v46 = vld [vmem:[%s2023_s11 + $0x28] sm:$0xff] }
 0x5a2   :  { %v698_v47 = vpop.f32.mrf.mxu1 }
 0x5a3   :  { %v701_v48 = vmul.f32 %v698_v47, %v698_v47  ;;  %v718_v62 = vsub.f32 0.0, %v698_v47 }
 0x5a5   :  { %v703_v51 = vrot.slane %v701_v48, 6  ;;  %v834_v48 = vld [vmem:[%s2023_s11 + $0x18] sm:$0xff] }
 0x5a7   :  { %v705_v52 = vsub.f32 %v698_v47, %v703_v51  ;;  %v835_v47 = vld [vmem:[%s2023_s11 + $0x20] sm:$0xff] }
 0x5a9   :  { %v706_v53 = vmax.f32 %v705_v52, 0.0  ;;  %v831_v52 = vld [vmem:[%s2023_s11] sm:$0xff] }
 0x5ab   :  { %v707_v54 = vadd.f32 1e-05, %v706_v53 }
 0x5ad   :  { %1194 = vrsqrt.f32 %v707_v54  ;;  %vm714_vm14 = vweird.f32 %v707_v54 }
 0x5b3   :  { %v1195_v55 = vpop.eup %1194 }
 0x5b4   :  { %v709_v56 = vmul.f32 %v1195_v55, %v707_v54  ;;  %vm715_vm13 = vweird.f32 %v1195_v55 }
 0x5b5   :  { %vm716_vm15 = vmor %vm714_vm14, %vm715_vm13 }
 0x5b6   :  { %v710_v58 = vmul.f32 %v1195_v55, %v709_v56 }
 0x5b8   :  { %v711_v57 = vmul.f32 0.5, %v710_v58 }
 0x5ba   :  { %v712_v59 = vsub.f32 1.5, %v711_v57 }
 0x5bc   :  { %v713_v60 = vmul.f32 %v1195_v55, %v712_v59 }
 0x5be   :  { %v717_v61 = vsel %vm716_vm15, %v1195_v55, %v713_v60 }
 0x5bf   :  { %v720_v63 = vrot.slane %v717_v61, 2 }
 0x5c1   :  { %v722_v0 = vmul.f32 %v720_v63, %v718_v62 }
 0x5c3   :  { %v724_v1 = vrot.slane %v722_v0, 6  ;;  %v911_v0 = vld [vmem:[%s2025_s13 + $0x38] sm:$0xff] }
 0x5c5   :  { %v726_v2 = vsel %vm443_vm5, %v720_v63, %v724_v1  ;;  %v910_v1 = vld [vmem:[%s2025_s13 + $0x30] sm:$0xff] }
 0x5c6   :  { %1151 = vmatmul.msk.f32.vlgmr.msra.gmra.mxu0 %vm654_vm12, %v726_v2  ;;  %v909_v2 = vld [vmem:[%s2025_s13 + $0x28] sm:$0xff] }
 0x643   :  { %v747_v4 = vpop.f32.mrf.mxu0 }
 0x644   :  { %1152 = vmatpush.msk.msra.mxu1 %vm482_vm7, %v747_v4  ;;  %v907_v4 = vld [vmem:[%s2025_s13 + $0x18] sm:$0xff] }
 0x645   :  { %1153 = vmatmul.msk.f32.vlgmr.msra.gmra.mxu1 %vm469_vm8, %v649_v3  ;;  %v908_v3 = vld [vmem:[%s2025_s13 + $0x20] sm:$0xff] }
 0x646   :  { %956 = vmatpush.msrb.mxu1 %v911_v0 }
 0x648   :  { %957 = vmatpush.msrb.mxu1 %v910_v1  ;;  %v1073_v1 = vld [vmem:[#allocation23] sm:$0xff] }
 0x64a   :  { %958 = vmatpush.msrb.mxu1 %v909_v2 }
 0x64c   :  { %959 = vmatpush.msrb.mxu1 %v908_v3 }
 0x64d   :  { %1154 = vmatmul.msk.f32.gmra.mxu1 %vm469_vm8, %v650_v5  ;;  %v906_v5 = vld [vmem:[%s2025_s13 + $0x10] sm:$0xff]  ;;  %s1542_s13 = smov [#allocation25]  }
 0x64e   :  { %960 = vmatpush.msrb.mxu1 %v907_v4  ;;  %s1116_s18 = sshll.u32 %s1542_s13, 4  ;;  %s1117_s18 = int_to_ptr.vmem [resolvable:$true] %s1116_s18 }
 0x650   :  { %961 = vmatpush.msrb.mxu1 %v906_v5 }
 0x652   :  { %962 = vmatpush.msrb.mxu1 %v905_v6 }
 0x654   :  { %963 = vmatpush.msrb.mxu1 %v904_v14 }
 0x656   :  { %1009 = vmatpush.msra.mxu1 %v916_v16 }
 0x6c2   :  { %v776_v12 = vpop.f32.mrf.mxu1 }
 0x6c3   :  { %v782_v18 = vmul.f32 %v776_v12, %v1852_v42  ;;  %v840_v42 = vld [vmem:[%s2023_s11 + $0x48] sm:$0xff] }
 0x6c4   :  { %869 = vmatpush.msrb.mxu3 %v840_v42  ;;  %v903_v12 = vld [vmem:[#allocation19] sm:$0xf]  ;;  %v1086_v42 = vld [vmem:[#allocation23 + $0x68] sm:$0xff] }
 0x6c6   :  { %870 = vmatpush.msrb.mxu3 %v839_v43  ;;  %v1085_v43 = vld [vmem:[#allocation23 + $0x60] sm:$0xff] }
 0x6c8   :  { %871 = vmatpush.msrb.mxu3 %v838_v44  ;;  %v1084_v44 = vld [vmem:[#allocation23 + $0x58] sm:$0xff] }
 0x6ca   :  { %v779_v19 = vpop.f32.mrf.mxu1  ;;  %872 = vmatpush.msrb.mxu3 %v837_v45  ;;  %v1083_v45 = vld [vmem:[#allocation23 + $0x50] sm:$0xff] }
 0x6cb   :  { %v783_v21 = vadd.f32 %v782_v18, %v779_v19  ;;  %v915_v19 = vld [vmem:[#allocation22 + $0x10] sm:$0xff] }
 0x6cc   :  { %873 = vmatpush.msrb.mxu3 %v836_v46  ;;  %1010 = vmatpush.msra.mxu1 %v915_v19  ;;  %v1082_v46 = vld [vmem:[#allocation23 + $0x48] sm:$0xff] }
 0x6cd   :  { %vm784_vm2 = vcmp.gt.f32.partialorder %v783_v21, 0.0  ;;  %v785_v23 = vmul.f32 0.01, %v783_v21 }
 0x6ce   :  { %874 = vmatpush.msrb.mxu3 %v835_v47  ;;  %1011 = vmatpush.msra.mxu1 %v914_v20 }
 0x6cf   :  { %v786_v25 = vsel %vm784_vm2, %v783_v21, %v785_v23 }
 0x6d0   :  { %787 = vst.msk [vmem:[#allocation3 + $0x1] sm:$0xf] %vm237_vm9, %v786_v25  ;;  %875 = vmatpush.msrb.mxu3 %v834_v48  ;;  %1012 = vmatpush.msra.mxu1 %v913_v22  ;;  %v1081_v48 = vld [vmem:[#allocation23 + $0x40] sm:$0xff] }
 0x6d1   :  { %789 = vst.msk [vmem:[#allocation3 + $0x3] sm:$0xf0] %vm788_vm3, %v786_v25 }
 0x6d2   :  { %876 = vmatpush.msrb.mxu3 %v833_v49 }
 0x6d4   :  { %877 = vmatpush.msrb.mxu3 %v832_v50 }
 0x6d6   :  { %878 = vmatpush.msrb.mxu3 %v831_v52 }
 0x6d7   :  { %v814_v34 = vld [vmem:[#allocation3 + $0x3] ss:$2 sm:$0x3]  ;;  %v806_v54 = vld [vmem:[#allocation3 + $0x2] ss:$2 sm:$0x3] }
 0x6d8   :  { %v816_v30 = vld [vmem:[#allocation3 + $0x9] ss:$2 sm:$0x3]  ;;  %v798_v35 = vld [vmem:[#allocation3 + $0x1] ss:$2 sm:$0x3] }
 0x6d9   :  { %v800_v31 = vld [vmem:[#allocation3 + $0x7] ss:$2 sm:$0x3]  ;;  %v818_v32 = vrot.slane %v816_v30, 6 }
 0x6da   :  { %v802_v33 = vrot.slane %v800_v31, 6  ;;  %v808_v51 = vld [vmem:[#allocation3 + $0x8] ss:$2 sm:$0x3] }
 0x6db   :  { %v820_v36 = vsel %vm443_vm5, %v814_v34, %v818_v32  ;;  %v810_v53 = vrot.slane %v808_v51, 6  ;;  %v792_v57 = vld [vmem:[#allocation3 + $0x6] ss:$2 sm:$0x3]  ;;  %v1080_v51 = vld [vmem:[#allocation23 + $0x38] sm:$0xff] }
 0x6dc   :  { %v804_v37 = vsel %vm443_vm5, %v798_v35, %v802_v33  ;;  %826 = vrot.lane.b32.xlu2 %v820_v36, %s1540_s22  ;;  %v794_v59 = vrot.slane %v792_v57, 6  ;;  %v790_v60 = vld [vmem:[#allocation3] ss:$2 sm:$0x3]  ;;  %v1076_v57 = vld [vmem:[#allocation23 + $0x18] sm:$0xff] }
 0x6dd   :  { %822 = vrot.lane.b32.xlu1 %v804_v37, %s1540_s22  ;;  %v812_v56 = vsel %vm443_vm5, %v806_v54, %v810_v53  ;;  %v1079_v53 = vld [vmem:[#allocation23 + $0x30] sm:$0xff] }
 0x6de   :  { %v796_v62 = vsel %vm443_vm5, %v790_v60, %v794_v59  ;;  %v1075_v59 = vld [vmem:[#allocation23 + $0x10] sm:$0xff]  ;;  %v1074_v60 = vld [vmem:[#allocation23 + $0x8] sm:$0xff] }
 0x736   :  { %v827_v55 = vpop.permute.xlu2 %826 }
 0x737   :  { %v830_v58 = vsel %vm234_vm0, %v812_v56, %v827_v55  ;;  %v1078_v55 = vld [vmem:[#allocation23 + $0x28] sm:$0xff] }
 0x738   :  { %899 = vmatmul.f32.vlgmr.msrb.gmra.mxu0 %v830_v58  ;;  %v1077_v58 = vld [vmem:[#allocation23 + $0x20] sm:$0xff] }
 0x74f   :  { %v823_v61 = vpop.permute.xlu1 %822 }
 0x750   :  { %v829_v63 = vsel %vm234_vm0, %v796_v62, %v823_v61 }
 0x751   :  { %879 = vmatmul.f32.vlgmr.msrb.gmra.mxu3 %v829_v63 }
 0x7b5   :  { %v900_v7 = vpop.f32.mrf.mxu0 }
 0x7d4   :  { %v880_v8 = vpop.f32.mrf.mxu3 }
 0x7d5   :  { %v901_v9 = vadd.f32 %v900_v7, %v880_v8 }
 0x7d7   :  { %v917_v10 = vmul.f32 %v901_v9, %v901_v9 }
 0x7d9   :  { %v919_v11 = vrot.slane %v917_v10, 4 }
 0x7db   :  { %v921_v13 = vsel %vm482_vm7, %v901_v9, %v919_v11 }
 0x7dc   :  { %940 = vmatpush.msrb.mxu2 %v921_v13 }
 0x7dd   :  { %1155 = vmatmul.msk.f32.vlgmr.msrb.gmra.mxu2 %vm445_vm6, %v903_v12 }
 0x7de   :  { %1089 = vmatpush.msra.mxu2 %v1088_v40 }
 0x7e0   :  { %1090 = vmatpush.msra.mxu2 %v1087_v41 }
 0x7e2   :  { %1091 = vmatpush.msra.mxu2 %v1086_v42 }
 0x7e4   :  { %1092 = vmatpush.msra.mxu2 %v1085_v43 }
 0x7e6   :  { %1093 = vmatpush.msra.mxu2 %v1084_v44 }
 0x7e8   :  { %1094 = vmatpush.msra.mxu2 %v1083_v45 }
 0x7ea   :  { %1095 = vmatpush.msra.mxu2 %v1082_v46 }
 0x7ec   :  { %1096 = vmatpush.msra.mxu2 %v1081_v48 }
 0x7ee   :  { %1097 = vmatpush.msra.mxu2 %v1080_v51 }
 0x7f0   :  { %1098 = vmatpush.msra.mxu2 %v1079_v53 }
 0x7f2   :  { %1099 = vmatpush.msra.mxu2 %v1078_v55 }
 0x7f4   :  { %1100 = vmatpush.msra.mxu2 %v1077_v58 }
 0x7f6   :  { %1101 = vmatpush.msra.mxu2 %v1076_v57 }
 0x7f8   :  { %1102 = vmatpush.msra.mxu2 %v1075_v59 }
 0x7fa   :  { %1103 = vmatpush.msra.mxu2 %v1074_v60 }
 0x7fc   :  { %1104 = vmatpush.msra.mxu2 %v1073_v1 }
 0x860   :  { %v942_v15 = vpop.f32.mrf.mxu2 }
 0x861   :  { %1156 = vmatmul.msk.f32.vlgmr.msrb.gmra.mxu1 %vm234_vm0, %v942_v15 }
 0x8de   :  { %v965_v17 = vpop.f32.mrf.mxu1 }
 0x8df   :  { %v968_v18 = vmul.f32 %v965_v17, %v965_v17  ;;  %v985_v33 = vsub.f32 0.0, %v965_v17 }
 0x8e1   :  { %v970_v21 = vrot.slane %v968_v18, 6 }
 0x8e3   :  { %v972_v23 = vsub.f32 %v965_v17, %v970_v21 }
 0x8e5   :  { %v973_v24 = vmax.f32 %v972_v23, 0.0 }
 0x8e7   :  { %v974_v25 = vadd.f32 1e-05, %v973_v24 }
 0x8e9   :  { %1196 = vrsqrt.f32 %v974_v25  ;;  %vm981_vm6 = vweird.f32 %v974_v25 }
 0x8ef   :  { %v1197_v26 = vpop.eup %1196 }
 0x8f0   :  { %v976_v27 = vmul.f32 %v1197_v26, %v974_v25  ;;  %vm982_vm4 = vweird.f32 %v1197_v26 }
 0x8f1   :  { %vm983_vm9 = vmor %vm981_vm6, %vm982_vm4 }
 0x8f2   :  { %v977_v28 = vmul.f32 %v1197_v26, %v976_v27 }
 0x8f4   :  { %v978_v29 = vmul.f32 0.5, %v977_v28 }
 0x8f6   :  { %v979_v30 = vsub.f32 1.5, %v978_v29 }
 0x8f8   :  { %v980_v31 = vmul.f32 %v1197_v26, %v979_v30 }
 0x8fa   :  { %v984_v32 = vsel %vm983_vm9, %v1197_v26, %v980_v31 }
 0x8fb   :  { %v987_v34 = vrot.slane %v984_v32, 2 }
 0x8fd   :  { %v989_v35 = vmul.f32 %v987_v34, %v985_v33 }
 0x8ff   :  { %v991_v36 = vrot.slane %v989_v35, 6 }
 0x901   :  { %v993_v37 = vsel %vm443_vm5, %v987_v34, %v991_v36  ;;  %vm1051_vm5 = vcmask 517120  }
 0x902   :  { %1157 = vmatmul.msk.f32.vlgmr.msra.gmra.mxu1 %vm371_vm1, %v993_v37 }
 0x97f   :  { %v1014_v39 = vpop.f32.mrf.mxu1 }
 0x980   :  { %1158 = vmatpush.msk.msrb.mxu1 %vm482_vm7, %v1014_v39  ;;  %vm1053_vm7 = vcmask 519170  }
 0x981   :  { %1159 = vmatmul.msk.f32.vlgmr.msrb.gmra.mxu1 %vm469_vm8, %v912_v38  ;;  %vm1060_vm8 = vcmask 1040384  }
 0x9fe   :  { %v1040_v47 = vpop.f32.mrf.mxu1 }
 0x9ff   :  { %v1043_v49 = vmul.f32 %v1040_v47, %v901_v9  ;;  %v1045_v50 = vrot.slane %v1040_v47, 4 }
 0xa01   :  { %v1047_v52 = vadd.f32 %v1045_v50, %v1043_v49 }
 0xa03   :  { %vm1048_vm1 = vcmp.gt.f32.partialorder %v1047_v52, 0.0  ;;  %v1049_v54 = vmul.f32 0.01, %v1047_v52 }
 0xa05   :  { %v1050_v56 = vsel %vm1048_vm1, %v1047_v52, %v1049_v54 }
 0xa06   :  { %1052 = vst.msk [vmem:[#allocation4] sm:$0x3] %vm1051_vm5, %v1050_v56 }
 0xa07   :  { %1054 = vst.msk [vmem:[#allocation4] sm:$0xc] %vm1053_vm7, %v1050_v56 }
 0xa0d   :  { %v1062_v63 = vld [vmem:[#allocation4 + $0x1] sm:$0x1]  ;;  %v1055_v4 = vld [vmem:[#allocation4] sm:$0x1] }
 0xa0e   :  { %v1063_v61 = vld [vmem:[#allocation4 + $0x3] sm:$0x1]  ;;  %v1056_v2 = vld [vmem:[#allocation4 + $0x2] sm:$0x1] }
 0xa0f   :  { %v1065_v62 = vrot.slane %v1063_v61, 7  ;;  %v1058_v3 = vrot.slane %v1056_v2, 7 }
 0xa11   :  { %v1067_v0 = vsel %vm1060_vm8, %v1062_v63, %v1065_v62  ;;  %v1061_v6 = vsel %vm1060_vm8, %v1055_v4, %v1058_v3 }
 0xa12   :  { %1069 = vrot.lane.b32.xlu2 %v1067_v0, %s1540_s22 }
 0xa6c   :  { %v1070_v5 = vpop.permute.xlu2 %1069 }
 0xa6d   :  { %v1072_v7 = vsel %vm234_vm0, %v1061_v6, %v1070_v5 }
 0xa6e   :  { %1105 = vmatmul.f32.vlgmr.msra.gmra.mxu2 %v1072_v7 }
 0xaf1   :  { %v1106_v8 = vpop.f32.mrf.mxu2 }
 0xaf2   :  { %1110 = vst.msk [vmem:[#allocation25] sm:$0x3] %vm1109_vm10, %v1106_v8 }
 0xaf3   :  { %1121 = dma.vmem_to_hbm [thread:$0]  %s1117_s18, 32, %s1119_s19, [#allocation7]  }
 0xaf4   :  { %1524 = dma.done.wait [#allocation7], 32  }
 0xaf5   :  { %1525 = vsyncadd [#allocation7], 4294967264 }
 0xaf6   :  { %1126 = vsyncpa [#allocation6], 1 }
 0xaf7   :  { %1127 = vsyncpa [#allocation9], 1 }
 0xaf8   :  { %1128 = vsyncpa [#allocation12], 1 }
 0xaf9   :  { %1129 = vsyncpa [#allocation15], 1 }
 0xafa   :  { %1130 = vsyncpa [#allocation18], 1 }
 0xafb   :  { %1131 = vsyncpa [#allocation21], 1 }
 0xafc   :  { %1132 = vsyncpa [#allocation24], 1 }
 0xafd   :  { %1133 = vsyncpa [#allocation7], 1 }

</bundles_post_ra>
